<compile_context>
chip_gen: v7x
topology: tpu7x:2x2x1
jax: 0.10.0
libtpu: 0.0.40
codegen_flags: <defaults>
</compile_context>

<pallas_src>
import functools

import jax
import jax.numpy as jnp
from jax.experimental import pallas as pl
from jax.experimental.pallas import tpu as pltpu

BN_EPS = 1e-5
_SUBLANE = 8


def _round_up(v, m):
    return (v + m - 1) // m * m


# ---------------------------------------------------------------------------
# Pallas kernel: whole forward pass in a single grid-less invocation (all
# activations and parameters are a few tens of KiB -> trivially VMEM resident).
# Activations live as (C, B*L): channels on sublanes, positions on lanes.
# ---------------------------------------------------------------------------
def _resnet_kernel(x_ref, wstem_ref, wblk_ref, bn_ref, fc_ref, out_ref, *,
                   B, L, n_blocks):
    BL = B * L
    C = wstem_ref.shape[0]            # 16 feature channels
    Cin = x_ref.shape[0]              # padded input channels (8)
    inv_n = 1.0 / BL

    x = x_ref[...]                    # (Cin, BL) f32

    # --- sequence-boundary masks: built & pre-broadcast ONCE, reused by all convs
    col = jax.lax.broadcasted_iota(jnp.int32, (1, BL), 1)
    has_left = ((col % L) != 0).astype(jnp.float32)           # (1, BL)
    has_right = ((col % L) != (L - 1)).astype(jnp.float32)    # (1, BL)
    mL_in = jnp.broadcast_to(has_left, (Cin, BL))
    mR_in = jnp.broadcast_to(has_right, (Cin, BL))
    mL = jnp.broadcast_to(has_left, (C, BL))
    mR = jnp.broadcast_to(has_right, (C, BL))

    def mm(w, v):                     # (M, K) @ (K, N) on the MXU, f32 accum
        return jax.lax.dot_general(w, v, (((1,), (0,)), ((), ())),
                                   preferred_element_type=jnp.float32)

    def conv3(a, w, m_left, m_right):
        # Conv1d(k=3, pad=1) as ONE matmul: w(Cout, 3*Ci) @ [x[l-1]; x[l]; x[l+1]]
        prv = jnp.roll(a, 1, axis=1) * m_left      # x[l-1], zeroed at l == 0
        nxt = jnp.roll(a, -1, axis=1) * m_right    # x[l+1], zeroed at l == L-1
        cat = jnp.concatenate([prv, a, nxt], axis=0).astype(jnp.bfloat16)
        return mm(w, cat)                          # (Cout, BL) f32

    bnp = bn_ref[...]                 # (C, 2 + 4n) f32, params as columns

    def bn(a, j):
        # Training-mode BatchNorm1d (biased batch var): both moments from a
        # single fused reduction over [a ; a*a], then one folded FMA.
        gamma = bnp[:, j:j + 1]                                    # (C, 1)
        beta = bnp[:, j + 1:j + 2]                                 # (C, 1)
        mom = jnp.sum(jnp.concatenate([a, a * a], axis=0),
                      axis=1, keepdims=True) * inv_n               # (2C, 1)
        mean = mom[:C]
        var = jnp.maximum(mom[C:] - mean * mean, 0.0)
        scale = gamma * jax.lax.rsqrt(var + BN_EPS)
        return a * scale + (beta - mean * scale)

    # --- stem: convIn -> bnIn -> relu ---
    z = conv3(x, wstem_ref[...], mL_in, mR_in)
    z = jnp.maximum(bn(z, 0), 0.0)

    # --- residual stack (identity shortcuts, static unroll) ---
    for i in range(n_blocks):
        resid = z
        j = 2 + 4 * i
        z = jnp.maximum(bn(conv3(z, wblk_ref[2 * i], mL, mR), j), 0.0)
        z = bn(conv3(z, wblk_ref[2 * i + 1], mL, mR), j + 2)
        z = jnp.maximum(z + resid, 0.0)

    # --- AdaptiveAvgPool2d((1,1)) on the (B, C, L) tensor: mean over C and L ---
    s1 = jnp.sum(z, axis=0, keepdims=True)                         # (1, BL)
    bidx = jax.lax.broadcasted_iota(jnp.int32, (B, BL), 0)
    pidx = jax.lax.broadcasted_iota(jnp.int32, (B, BL), 1)
    sel = jnp.logical_and(pidx >= bidx * L,
                          pidx < (bidx + 1) * L).astype(jnp.float32)  # (B, BL)
    pooled = jnp.sum(sel * s1, axis=1, keepdims=True) * (1.0 / (L * C))  # (B, 1)

    # --- fcOut (in_features=1) + LogSoftmax(dim=-1), fp32 ---
    fc = fc_ref[...]                                               # (2, NC)
    logits = pooled * fc[0:1, :] + fc[1:2, :]                      # (B, NC)
    m = jnp.max(logits, axis=-1, keepdims=True)
    lse = jnp.log(jnp.sum(jnp.exp(logits - m), axis=-1, keepdims=True)) + m
    out_ref[...] = (logits - lse).astype(out_ref.dtype)


# ---------------------------------------------------------------------------
# One-time parameter packing (hoisted OUT of the per-call path).
# ---------------------------------------------------------------------------
def pack_params(params, flag=False):
    """Pack the module's params into the 4 kernel inputs. Call once, reuse."""
    (wIn, gIn, bIn, bw1, bg1, bb1, bw2, bg2, bb2,
     fcw12, fcb12, fcw4, fcb4) = params
    fcw, fcb = (fcw4, fcb4) if flag else (fcw12, fcb12)

    K, Cin, C = wIn.shape                        # (3, 3, 16), taps-first
    n = bw1.shape[0]
    cin_pad = _round_up(Cin, _SUBLANE)           # 8: sublane-aligned stem taps

    # Stem weight -> (Cout, K*cin_pad), columns ordered tap*cin_pad + cin,
    # zero columns for the padded input channels.
    w_stem = jnp.transpose(wIn, (2, 0, 1))                          # (C, K, Cin)
    w_stem = jnp.pad(w_stem, ((0, 0), (0, 0), (0, cin_pad - Cin)))
    w_stem = w_stem.reshape(C, K * cin_pad).astype(jnp.bfloat16)

    # Block weights -> (2n, Cout, K*C), columns ordered tap*C + cin.
    wb = jnp.stack([bw1, bw2], axis=1)                              # (n, 2, K, C, C)
    w_blk = (jnp.transpose(wb, (0, 1, 4, 2, 3))
             .reshape(2 * n, C, K * C).astype(jnp.bfloat16))

    # BN gammas/betas packed as columns: [gIn, bIn] + per block [g1, b1, g2, b2].
    cols = [gIn.reshape(C, 1), bIn.reshape(C, 1)]
    for i in range(n):
        cols += [bg1[i].reshape(C, 1), bb1[i].reshape(C, 1),
                 bg2[i].reshape(C, 1), bb2[i].reshape(C, 1)]
    bn_packed = jnp.concatenate(cols, axis=1).astype(jnp.float32)   # (C, 2+4n)

    fc_packed = jnp.concatenate([fcw.reshape(1, -1), fcb.reshape(1, -1)],
                                axis=0).astype(jnp.float32)         # (2, NC)
    return w_stem, w_blk, bn_packed, fc_packed


# ---------------------------------------------------------------------------
# Jitted forward: only relayouts x and launches the Pallas kernel.
# ---------------------------------------------------------------------------
@jax.jit
def resnet_forward(x, w_stem, w_blk, bn_packed, fc_packed):
    B, L, Cin = x.shape
    n = w_blk.shape[0] // 2
    num_classes = fc_packed.shape[1]
    cin_pad = _round_up(Cin, _SUBLANE)

    # (B, L, Cin) -> (cin_pad, B*L): channels on sublanes, positions on lanes.
    x_cl = jnp.transpose(x, (2, 0, 1)).reshape(Cin, B * L)
    x_cl = jnp.pad(x_cl, ((0, cin_pad - Cin), (0, 0)))

    vmem = pl.BlockSpec(memory_space=pltpu.MemorySpace.VMEM)
    return pl.pallas_call(
        functools.partial(_resnet_kernel, B=B, L=L, n_blocks=n),
        out_shape=jax.ShapeDtypeStruct((B, num_classes), jnp.float32),
        in_specs=[vmem] * 5,
        out_specs=vmem,
        compiler_params=pltpu.CompilerParams(
            vmem_limit_bytes=32 * 1024 * 1024),   # explicit; fits v7x's 64 MiB
    )(x_cl, w_stem, w_blk, bn_packed, fc_packed)


# ---------------------------------------------------------------------------
# Pure-JAX fp32 reference (mirrors the PyTorch module, channels-last)
# ---------------------------------------------------------------------------
def _ref_forward(x, params, flag=False):
    (wIn, gIn, bIn, bw1, bg1, bb1, bw2, bg2, bb2,
     fcw12, fcb12, fcw4, fcb4) = params
    fcw, fcb = (fcw4, fcb4) if flag else (fcw12, fcb12)

    def conv(a, w):                       # a: (B,L,Cin), w: (3,Cin,Cout)
        Bb, Ll, Ci = a.shape
        zero = jnp.zeros((Bb, 1, Ci), a.dtype)
        ap = jnp.concatenate([zero, a[:, :-1]], axis=1)
        an = jnp.concatenate([a[:, 1:], zero], axis=1)
        mm = lambda t, wt: jnp.einsum("blc,cd->bld", t, wt, precision="highest")
        return mm(ap, w[0]) + mm(a, w[1]) + mm(an, w[2])

    def bn(a, g, b):
        mean = jnp.mean(a, axis=(0, 1), keepdims=True)
        var = jnp.mean((a - mean) ** 2, axis=(0, 1), keepdims=True)
        return ((a - mean) * jax.lax.rsqrt(var + BN_EPS) * g.reshape(1, 1, -1)
                + b.reshape(1, 1, -1))

    z = jax.nn.relu(bn(conv(x, wIn), gIn, bIn))
    for i in range(bw1.shape[0]):
        r = z
        z = jax.nn.relu(bn(conv(z, bw1[i]), bg1[i], bb1[i]))
        z = bn(conv(z, bw2[i]), bg2[i], bb2[i])
        z = jax.nn.relu(z + r)
    pooled = jnp.mean(z, axis=(1, 2)).reshape(-1, 1)
    logits = pooled @ fcw + fcb
    return jax.nn.log_softmax(logits, axis=-1)


# ---------------------------------------------------------------------------
# Deterministic parameter init (matches PyTorch __init__ shapes / init scheme)
# ---------------------------------------------------------------------------
def init_params(key, n=2, C=16, Cin=3):
    keys = jax.random.split(key, 3 + 2 * n)

    def conv_w(k, cout, cin, ksize=3):
        # kaiming_normal_(mode='fan_out', nonlinearity='relu'): std = sqrt(2/(cout*k))
        std = (2.0 / (cout * ksize)) ** 0.5
        w = std * jax.random.normal(k, (cout, cin, ksize), jnp.float32)
        return jnp.transpose(w, (2, 1, 0))       # -> (K, Cin, Cout) taps-first

    wIn = conv_w(keys[0], C, Cin)
    gIn = jnp.ones((1, C), jnp.float32)
    bIn = jnp.zeros((1, C), jnp.float32)

    bw1 = jnp.stack([conv_w(keys[1 + i], C, C) for i in range(n)])          # (n,3,C,C)
    bw2 = jnp.stack([conv_w(keys[1 + n + i], C, C) for i in range(n)])      # (n,3,C,C)
    bg1 = jnp.ones((n, 1, C), jnp.float32);  bb1 = jnp.zeros((n, 1, C), jnp.float32)
    bg2 = jnp.ones((n, 1, C), jnp.float32);  bb2 = jnp.zeros((n, 1, C), jnp.float32)

    # Linear(1, 12) / Linear(1, 4): kaiming_normal_ (fan_in=1 -> std=sqrt(2)), bias=0
    fcw12 = (2.0 ** 0.5) * jax.random.normal(keys[1 + 2 * n], (1, 12), jnp.float32)
    fcb12 = jnp.zeros((1, 12), jnp.float32)
    fcw4 = (2.0 ** 0.5) * jax.random.normal(keys[2 + 2 * n], (1, 4), jnp.float32)
    fcb4 = jnp.zeros((1, 4), jnp.float32)

    return (wIn, gIn, bIn, bw1, bg1, bb1, bw2, bg2, bb2,
            fcw12, fcb12, fcw4, fcb4)


if __name__ == "__main__":
    key = jax.random.PRNGKey(0)
    kx, kp = jax.random.split(key)

    B, L = 2, 16                       # input to ResNet.forward: (B, L, 3)
    x = jax.random.normal(kx, (B, L, 3), jnp.float32)
    params = init_params(kp, n=2)

    # Pack parameters ONCE (hoisted out of the per-step forward path).
    packed12 = pack_params(params, flag=False)
    packed4 = pack_params(params, flag=True)

    out = jax.block_until_ready(resnet_forward(x, *packed12))     # (B, 12)
    assert out.shape == (B, 12)
    assert bool(jnp.all(jnp.isfinite(out)))
    # log-softmax rows must (approximately) exponentiate-sum to 1
    assert bool(jnp.allclose(jnp.sum(jnp.exp(out), axis=-1), 1.0, atol=1e-5))

    # pure-JAX fp32 reference check (loose tolerance: kernel matmuls are bf16)
    ref = _ref_forward(x, params, flag=False)
    assert bool(jnp.allclose(out, ref, atol=2e-1)), (out, ref)

    out4 = jax.block_until_ready(resnet_forward(x, *packed4))     # (B, 4)
    assert out4.shape == (B, 4)
    assert bool(jnp.all(jnp.isfinite(out4)))
    assert bool(jnp.allclose(jnp.sum(jnp.exp(out4), axis=-1), 1.0, atol=1e-5))

    print("KERNEL_OK")
</pallas_src>

<mosaic_0001>
module attributes {stable_mosaic.version = 11 : i64} {
  func.func @_resnet_kernel(%arg0: memref<8x32xf32, #tpu.memory_space<vmem>>, %arg1: memref<16x24xbf16, #tpu.memory_space<vmem>>, %arg2: memref<4x16x48xbf16, #tpu.memory_space<vmem>>, %arg3: memref<16x10xf32, #tpu.memory_space<vmem>>, %arg4: memref<2x12xf32, #tpu.memory_space<vmem>>, %arg5: memref<2x12xf32, #tpu.memory_space<vmem>>) attributes {dimension_semantics = [], scalar_prefetch = 0 : i64, scratch_operands = 0 : i64, tpu.core_type = #tpu.core_type<tc>} {
    %c0 = arith.constant 0 : index
    %c0_0 = arith.constant 0 : index
    %0 = vector.load %arg0[%c0, %c0_0] : memref<8x32xf32, #tpu.memory_space<vmem>>, vector<8x32xf32>
    %1 = tpu.iota {dimensions = array<i32: 1>} : vector<1x32xi32>
    %c16_i32 = arith.constant 16 : i32
    %c0_i32 = arith.constant 0 : i32
    %2 = arith.cmpi eq, %c16_i32, %c0_i32 : i32
    %c1_i32 = arith.constant 1 : i32
    %3 = arith.select %2, %c1_i32, %c16_i32 : i32
    %4 = vector.broadcast %3 : i32 to vector<1x32xi32>
    %5 = arith.remsi %1, %4 : vector<1x32xi32>
    %c0_i32_1 = arith.constant 0 : i32
    %6 = vector.broadcast %c0_i32_1 : i32 to vector<1x32xi32>
    %7 = arith.cmpi ne, %5, %6 : vector<1x32xi32>
    %c0_i32_2 = arith.constant 0 : i32
    %8 = vector.broadcast %c0_i32_2 : i32 to vector<1x32xi32>
    %9 = arith.cmpi slt, %5, %8 : vector<1x32xi32>
    %c0_i32_3 = arith.constant 0 : i32
    %10 = arith.cmpi slt, %3, %c0_i32_3 : i32
    %11 = vector.broadcast %10 : i1 to vector<1x32xi1>
    %12 = vector.broadcast %11 : vector<1x32xi1> to vector<1x32xi1>
    %13 = arith.xori %9, %12 : vector<1x32xi1>
    %14 = arith.andi %13, %7 : vector<1x32xi1>
    %15 = vector.broadcast %3 : i32 to vector<1x32xi32>
    %16 = arith.addi %5, %15 : vector<1x32xi32>
    %17 = arith.select %14, %16, %5 : vector<1x32xi1>, vector<1x32xi32>
    %c0_i32_4 = arith.constant 0 : i32
    %18 = vector.broadcast %c0_i32_4 : i32 to vector<1x32xi32>
    %19 = arith.cmpi ne, %17, %18 : vector<1x32xi32>
    %20 = arith.extui %19 : vector<1x32xi1> to vector<1x32xi32>
    %21 = arith.sitofp %20 : vector<1x32xi32> to vector<1x32xf32>
    %c16_i32_5 = arith.constant 16 : i32
    %c0_i32_6 = arith.constant 0 : i32
    %22 = arith.cmpi eq, %c16_i32_5, %c0_i32_6 : i32
    %c1_i32_7 = arith.constant 1 : i32
    %23 = arith.select %22, %c1_i32_7, %c16_i32_5 : i32
    %24 = vector.broadcast %23 : i32 to vector<1x32xi32>
    %25 = arith.remsi %1, %24 : vector<1x32xi32>
    %c0_i32_8 = arith.constant 0 : i32
    %26 = vector.broadcast %c0_i32_8 : i32 to vector<1x32xi32>
    %27 = arith.cmpi ne, %25, %26 : vector<1x32xi32>
    %c0_i32_9 = arith.constant 0 : i32
    %28 = vector.broadcast %c0_i32_9 : i32 to vector<1x32xi32>
    %29 = arith.cmpi slt, %25, %28 : vector<1x32xi32>
    %c0_i32_10 = arith.constant 0 : i32
    %30 = arith.cmpi slt, %23, %c0_i32_10 : i32
    %31 = vector.broadcast %30 : i1 to vector<1x32xi1>
    %32 = vector.broadcast %31 : vector<1x32xi1> to vector<1x32xi1>
    %33 = arith.xori %29, %32 : vector<1x32xi1>
    %34 = arith.andi %33, %27 : vector<1x32xi1>
    %35 = vector.broadcast %23 : i32 to vector<1x32xi32>
    %36 = arith.addi %25, %35 : vector<1x32xi32>
    %37 = arith.select %34, %36, %25 : vector<1x32xi1>, vector<1x32xi32>
    %c15_i32 = arith.constant 15 : i32
    %38 = vector.broadcast %c15_i32 : i32 to vector<1x32xi32>
    %39 = arith.cmpi ne, %37, %38 : vector<1x32xi32>
    %40 = arith.extui %39 : vector<1x32xi1> to vector<1x32xi32>
    %41 = arith.sitofp %40 : vector<1x32xi32> to vector<1x32xf32>
    %42 = vector.shape_cast %21 : vector<1x32xf32> to vector<1x32xf32>
    %43 = vector.broadcast %42 : vector<1x32xf32> to vector<8x32xf32>
    %44 = vector.shape_cast %41 : vector<1x32xf32> to vector<1x32xf32>
    %45 = vector.broadcast %44 : vector<1x32xf32> to vector<8x32xf32>
    %46 = vector.shape_cast %21 : vector<1x32xf32> to vector<1x32xf32>
    %47 = vector.broadcast %46 : vector<1x32xf32> to vector<16x32xf32>
    %48 = vector.shape_cast %41 : vector<1x32xf32> to vector<1x32xf32>
    %49 = vector.broadcast %48 : vector<1x32xf32> to vector<16x32xf32>
    %c0_11 = arith.constant 0 : index
    %c0_12 = arith.constant 0 : index
    %50 = vector.load %arg3[%c0_11, %c0_12] : memref<16x10xf32, #tpu.memory_space<vmem>>, vector<16x10xf32>
    %c0_13 = arith.constant 0 : index
    %c0_14 = arith.constant 0 : index
    %51 = vector.load %arg1[%c0_13, %c0_14] : memref<16x24xbf16, #tpu.memory_space<vmem>>, vector<16x24xbf16>
    %52 = vector.extract_strided_slice %0 {offsets = [0, 31], sizes = [8, 1], strides = [1, 1]} : vector<8x32xf32> to vector<8x1xf32>
    %53 = vector.extract_strided_slice %0 {offsets = [0, 0], sizes = [8, 31], strides = [1, 1]} : vector<8x32xf32> to vector<8x31xf32>
    %54 = tpu.concatenate %52, %53 in 1 : vector<8x1xf32>, vector<8x31xf32> -> vector<8x32xf32>
    %55 = arith.mulf %54, %43 : vector<8x32xf32>
    %56 = vector.extract_strided_slice %0 {offsets = [0, 1], sizes = [8, 31], strides = [1, 1]} : vector<8x32xf32> to vector<8x31xf32>
    %57 = vector.extract_strided_slice %0 {offsets = [0, 0], sizes = [8, 1], strides = [1, 1]} : vector<8x32xf32> to vector<8x1xf32>
    %58 = tpu.concatenate %56, %57 in 1 : vector<8x31xf32>, vector<8x1xf32> -> vector<8x32xf32>
    %59 = arith.mulf %58, %45 : vector<8x32xf32>
    %60 = tpu.concatenate %55, %0, %59 in 0 : vector<8x32xf32>, vector<8x32xf32>, vector<8x32xf32> -> vector<24x32xf32>
    %61 = arith.truncf %60 : vector<24x32xf32> to vector<24x32xbf16>
    %cst = arith.constant dense<0.000000e+00> : vector<16x32xf32>
    %62 = tpu.matmul %51, %61, %cst {dimension_numbers = #tpu.dot_dimension_numbers<[1], [0], [0], [1], [0, 0, 1, 1], [], []>} : vector<16x24xbf16>, vector<24x32xbf16>, vector<16x32xf32> -> vector<16x32xf32>
    %63 = vector.extract_strided_slice %50 {offsets = [0, 0], sizes = [16, 1], strides = [1, 1]} : vector<16x10xf32> to vector<16x1xf32>
    %64 = vector.extract_strided_slice %50 {offsets = [0, 1], sizes = [16, 1], strides = [1, 1]} : vector<16x10xf32> to vector<16x1xf32>
    %65 = arith.mulf %62, %62 : vector<16x32xf32>
    %66 = tpu.concatenate %62, %65 in 0 : vector<16x32xf32>, vector<16x32xf32> -> vector<32x32xf32>
    %cst_15 = arith.constant dense<0.000000e+00> : vector<32xf32>
    %67 = vector.multi_reduction <add>, %66, %cst_15 [1] : vector<32x32xf32> to vector<32xf32>
    %68 = vector.shape_cast %67 : vector<32xf32> to vector<32x1xf32>
    %cst_16 = arith.constant 3.125000e-02 : f32
    %69 = vector.broadcast %cst_16 : f32 to vector<32x1xf32>
    %70 = arith.mulf %68, %69 : vector<32x1xf32>
    %71 = vector.extract_strided_slice %70 {offsets = [0, 0], sizes = [16, 1], strides = [1, 1]} : vector<32x1xf32> to vector<16x1xf32>
    %72 = vector.extract_strided_slice %70 {offsets = [16, 0], sizes = [16, 1], strides = [1, 1]} : vector<32x1xf32> to vector<16x1xf32>
    %73 = arith.mulf %71, %71 : vector<16x1xf32>
    %74 = arith.subf %72, %73 : vector<16x1xf32>
    %cst_17 = arith.constant 0.000000e+00 : f32
    %75 = vector.broadcast %cst_17 : f32 to vector<16x1xf32>
    %76 = arith.maximumf %74, %75 : vector<16x1xf32>
    %cst_18 = arith.constant 9.99999974E-6 : f32
    %77 = vector.broadcast %cst_18 : f32 to vector<16x1xf32>
    %78 = arith.addf %76, %77 : vector<16x1xf32>
    %79 = math.rsqrt %78 : vector<16x1xf32>
    %80 = arith.mulf %63, %79 : vector<16x1xf32>
    %81 = vector.broadcast %80 : vector<16x1xf32> to vector<16x32xf32>
    %82 = arith.mulf %62, %81 : vector<16x32xf32>
    %83 = arith.mulf %71, %80 : vector<16x1xf32>
    %84 = arith.subf %64, %83 : vector<16x1xf32>
    %85 = vector.broadcast %84 : vector<16x1xf32> to vector<16x32xf32>
    %86 = arith.addf %82, %85 : vector<16x32xf32>
    %cst_19 = arith.constant 0.000000e+00 : f32
    %87 = vector.broadcast %cst_19 : f32 to vector<16x32xf32>
    %88 = arith.maximumf %86, %87 : vector<16x32xf32>
    %c0_20 = arith.constant 0 : index
    %c0_21 = arith.constant 0 : index
    %c0_22 = arith.constant 0 : index
    %89 = vector.load %arg2[%c0_20, %c0_21, %c0_22] : memref<4x16x48xbf16, #tpu.memory_space<vmem>>, vector<1x16x48xbf16>
    %90 = vector.shape_cast %89 : vector<1x16x48xbf16> to vector<16x48xbf16>
    %91 = vector.extract_strided_slice %88 {offsets = [0, 31], sizes = [16, 1], strides = [1, 1]} : vector<16x32xf32> to vector<16x1xf32>
    %92 = vector.extract_strided_slice %88 {offsets = [0, 0], sizes = [16, 31], strides = [1, 1]} : vector<16x32xf32> to vector<16x31xf32>
    %93 = tpu.concatenate %91, %92 in 1 : vector<16x1xf32>, vector<16x31xf32> -> vector<16x32xf32>
    %94 = arith.mulf %93, %47 : vector<16x32xf32>
    %95 = vector.extract_strided_slice %88 {offsets = [0, 1], sizes = [16, 31], strides = [1, 1]} : vector<16x32xf32> to vector<16x31xf32>
    %96 = vector.extract_strided_slice %88 {offsets = [0, 0], sizes = [16, 1], strides = [1, 1]} : vector<16x32xf32> to vector<16x1xf32>
    %97 = tpu.concatenate %95, %96 in 1 : vector<16x31xf32>, vector<16x1xf32> -> vector<16x32xf32>
    %98 = arith.mulf %97, %49 : vector<16x32xf32>
    %99 = tpu.concatenate %94, %88, %98 in 0 : vector<16x32xf32>, vector<16x32xf32>, vector<16x32xf32> -> vector<48x32xf32>
    %100 = arith.truncf %99 : vector<48x32xf32> to vector<48x32xbf16>
    %cst_23 = arith.constant dense<0.000000e+00> : vector<16x32xf32>
    %101 = tpu.matmul %90, %100, %cst_23 {dimension_numbers = #tpu.dot_dimension_numbers<[1], [0], [0], [1], [0, 0, 1, 1], [], []>} : vector<16x48xbf16>, vector<48x32xbf16>, vector<16x32xf32> -> vector<16x32xf32>
    %102 = vector.extract_strided_slice %50 {offsets = [0, 2], sizes = [16, 1], strides = [1, 1]} : vector<16x10xf32> to vector<16x1xf32>
    %103 = vector.extract_strided_slice %50 {offsets = [0, 3], sizes = [16, 1], strides = [1, 1]} : vector<16x10xf32> to vector<16x1xf32>
    %104 = arith.mulf %101, %101 : vector<16x32xf32>
    %105 = tpu.concatenate %101, %104 in 0 : vector<16x32xf32>, vector<16x32xf32> -> vector<32x32xf32>
    %cst_24 = arith.constant dense<0.000000e+00> : vector<32xf32>
    %106 = vector.multi_reduction <add>, %105, %cst_24 [1] : vector<32x32xf32> to vector<32xf32>
    %107 = vector.shape_cast %106 : vector<32xf32> to vector<32x1xf32>
    %cst_25 = arith.constant 3.125000e-02 : f32
    %108 = vector.broadcast %cst_25 : f32 to vector<32x1xf32>
    %109 = arith.mulf %107, %108 : vector<32x1xf32>
    %110 = vector.extract_strided_slice %109 {offsets = [0, 0], sizes = [16, 1], strides = [1, 1]} : vector<32x1xf32> to vector<16x1xf32>
    %111 = vector.extract_strided_slice %109 {offsets = [16, 0], sizes = [16, 1], strides = [1, 1]} : vector<32x1xf32> to vector<16x1xf32>
    %112 = arith.mulf %110, %110 : vector<16x1xf32>
    %113 = arith.subf %111, %112 : vector<16x1xf32>
    %cst_26 = arith.constant 0.000000e+00 : f32
    %114 = vector.broadcast %cst_26 : f32 to vector<16x1xf32>
    %115 = arith.maximumf %113, %114 : vector<16x1xf32>
    %cst_27 = arith.constant 9.99999974E-6 : f32
    %116 = vector.broadcast %cst_27 : f32 to vector<16x1xf32>
    %117 = arith.addf %115, %116 : vector<16x1xf32>
    %118 = math.rsqrt %117 : vector<16x1xf32>
    %119 = arith.mulf %102, %118 : vector<16x1xf32>
    %120 = vector.broadcast %119 : vector<16x1xf32> to vector<16x32xf32>
    %121 = arith.mulf %101, %120 : vector<16x32xf32>
    %122 = arith.mulf %110, %119 : vector<16x1xf32>
    %123 = arith.subf %103, %122 : vector<16x1xf32>
    %124 = vector.broadcast %123 : vector<16x1xf32> to vector<16x32xf32>
    %125 = arith.addf %121, %124 : vector<16x32xf32>
    %cst_28 = arith.constant 0.000000e+00 : f32
    %126 = vector.broadcast %cst_28 : f32 to vector<16x32xf32>
    %127 = arith.maximumf %125, %126 : vector<16x32xf32>
    %c1 = arith.constant 1 : index
    %c0_29 = arith.constant 0 : index
    %c0_30 = arith.constant 0 : index
    %128 = vector.load %arg2[%c1, %c0_29, %c0_30] : memref<4x16x48xbf16, #tpu.memory_space<vmem>>, vector<1x16x48xbf16>
    %129 = vector.shape_cast %128 : vector<1x16x48xbf16> to vector<16x48xbf16>
    %130 = vector.extract_strided_slice %127 {offsets = [0, 31], sizes = [16, 1], strides = [1, 1]} : vector<16x32xf32> to vector<16x1xf32>
    %131 = vector.extract_strided_slice %127 {offsets = [0, 0], sizes = [16, 31], strides = [1, 1]} : vector<16x32xf32> to vector<16x31xf32>
    %132 = tpu.concatenate %130, %131 in 1 : vector<16x1xf32>, vector<16x31xf32> -> vector<16x32xf32>
    %133 = arith.mulf %132, %47 : vector<16x32xf32>
    %134 = vector.extract_strided_slice %127 {offsets = [0, 1], sizes = [16, 31], strides = [1, 1]} : vector<16x32xf32> to vector<16x31xf32>
    %135 = vector.extract_strided_slice %127 {offsets = [0, 0], sizes = [16, 1], strides = [1, 1]} : vector<16x32xf32> to vector<16x1xf32>
    %136 = tpu.concatenate %134, %135 in 1 : vector<16x31xf32>, vector<16x1xf32> -> vector<16x32xf32>
    %137 = arith.mulf %136, %49 : vector<16x32xf32>
    %138 = tpu.concatenate %133, %127, %137 in 0 : vector<16x32xf32>, vector<16x32xf32>, vector<16x32xf32> -> vector<48x32xf32>
    %139 = arith.truncf %138 : vector<48x32xf32> to vector<48x32xbf16>
    %cst_31 = arith.constant dense<0.000000e+00> : vector<16x32xf32>
    %140 = tpu.matmul %129, %139, %cst_31 {dimension_numbers = #tpu.dot_dimension_numbers<[1], [0], [0], [1], [0, 0, 1, 1], [], []>} : vector<16x48xbf16>, vector<48x32xbf16>, vector<16x32xf32> -> vector<16x32xf32>
    %141 = vector.extract_strided_slice %50 {offsets = [0, 4], sizes = [16, 1], strides = [1, 1]} : vector<16x10xf32> to vector<16x1xf32>
    %142 = vector.extract_strided_slice %50 {offsets = [0, 5], sizes = [16, 1], strides = [1, 1]} : vector<16x10xf32> to vector<16x1xf32>
    %143 = arith.mulf %140, %140 : vector<16x32xf32>
    %144 = tpu.concatenate %140, %143 in 0 : vector<16x32xf32>, vector<16x32xf32> -> vector<32x32xf32>
    %cst_32 = arith.constant dense<0.000000e+00> : vector<32xf32>
    %145 = vector.multi_reduction <add>, %144, %cst_32 [1] : vector<32x32xf32> to vector<32xf32>
    %146 = vector.shape_cast %145 : vector<32xf32> to vector<32x1xf32>
    %cst_33 = arith.constant 3.125000e-02 : f32
    %147 = vector.broadcast %cst_33 : f32 to vector<32x1xf32>
    %148 = arith.mulf %146, %147 : vector<32x1xf32>
    %149 = vector.extract_strided_slice %148 {offsets = [0, 0], sizes = [16, 1], strides = [1, 1]} : vector<32x1xf32> to vector<16x1xf32>
    %150 = vector.extract_strided_slice %148 {offsets = [16, 0], sizes = [16, 1], strides = [1, 1]} : vector<32x1xf32> to vector<16x1xf32>
    %151 = arith.mulf %149, %149 : vector<16x1xf32>
    %152 = arith.subf %150, %151 : vector<16x1xf32>
    %cst_34 = arith.constant 0.000000e+00 : f32
    %153 = vector.broadcast %cst_34 : f32 to vector<16x1xf32>
    %154 = arith.maximumf %152, %153 : vector<16x1xf32>
    %cst_35 = arith.constant 9.99999974E-6 : f32
    %155 = vector.broadcast %cst_35 : f32 to vector<16x1xf32>
    %156 = arith.addf %154, %155 : vector<16x1xf32>
    %157 = math.rsqrt %156 : vector<16x1xf32>
    %158 = arith.mulf %141, %157 : vector<16x1xf32>
    %159 = vector.broadcast %158 : vector<16x1xf32> to vector<16x32xf32>
    %160 = arith.mulf %140, %159 : vector<16x32xf32>
    %161 = arith.mulf %149, %158 : vector<16x1xf32>
    %162 = arith.subf %142, %161 : vector<16x1xf32>
    %163 = vector.broadcast %162 : vector<16x1xf32> to vector<16x32xf32>
    %164 = arith.addf %160, %163 : vector<16x32xf32>
    %165 = arith.addf %164, %88 : vector<16x32xf32>
    %cst_36 = arith.constant 0.000000e+00 : f32
    %166 = vector.broadcast %cst_36 : f32 to vector<16x32xf32>
    %167 = arith.maximumf %165, %166 : vector<16x32xf32>
    %c2 = arith.constant 2 : index
    %c0_37 = arith.constant 0 : index
    %c0_38 = arith.constant 0 : index
    %168 = vector.load %arg2[%c2, %c0_37, %c0_38] : memref<4x16x48xbf16, #tpu.memory_space<vmem>>, vector<1x16x48xbf16>
    %169 = vector.shape_cast %168 : vector<1x16x48xbf16> to vector<16x48xbf16>
    %170 = vector.extract_strided_slice %167 {offsets = [0, 31], sizes = [16, 1], strides = [1, 1]} : vector<16x32xf32> to vector<16x1xf32>
    %171 = vector.extract_strided_slice %167 {offsets = [0, 0], sizes = [16, 31], strides = [1, 1]} : vector<16x32xf32> to vector<16x31xf32>
    %172 = tpu.concatenate %170, %171 in 1 : vector<16x1xf32>, vector<16x31xf32> -> vector<16x32xf32>
    %173 = arith.mulf %172, %47 : vector<16x32xf32>
    %174 = vector.extract_strided_slice %167 {offsets = [0, 1], sizes = [16, 31], strides = [1, 1]} : vector<16x32xf32> to vector<16x31xf32>
    %175 = vector.extract_strided_slice %167 {offsets = [0, 0], sizes = [16, 1], strides = [1, 1]} : vector<16x32xf32> to vector<16x1xf32>
    %176 = tpu.concatenate %174, %175 in 1 : vector<16x31xf32>, vector<16x1xf32> -> vector<16x32xf32>
    %177 = arith.mulf %176, %49 : vector<16x32xf32>
    %178 = tpu.concatenate %173, %167, %177 in 0 : vector<16x32xf32>, vector<16x32xf32>, vector<16x32xf32> -> vector<48x32xf32>
    %179 = arith.truncf %178 : vector<48x32xf32> to vector<48x32xbf16>
    %cst_39 = arith.constant dense<0.000000e+00> : vector<16x32xf32>
    %180 = tpu.matmul %169, %179, %cst_39 {dimension_numbers = #tpu.dot_dimension_numbers<[1], [0], [0], [1], [0, 0, 1, 1], [], []>} : vector<16x48xbf16>, vector<48x32xbf16>, vector<16x32xf32> -> vector<16x32xf32>
    %181 = vector.extract_strided_slice %50 {offsets = [0, 6], sizes = [16, 1], strides = [1, 1]} : vector<16x10xf32> to vector<16x1xf32>
    %182 = vector.extract_strided_slice %50 {offsets = [0, 7], sizes = [16, 1], strides = [1, 1]} : vector<16x10xf32> to vector<16x1xf32>
    %183 = arith.mulf %180, %180 : vector<16x32xf32>
    %184 = tpu.concatenate %180, %183 in 0 : vector<16x32xf32>, vector<16x32xf32> -> vector<32x32xf32>
    %cst_40 = arith.constant dense<0.000000e+00> : vector<32xf32>
    %185 = vector.multi_reduction <add>, %184, %cst_40 [1] : vector<32x32xf32> to vector<32xf32>
    %186 = vector.shape_cast %185 : vector<32xf32> to vector<32x1xf32>
    %cst_41 = arith.constant 3.125000e-02 : f32
    %187 = vector.broadcast %cst_41 : f32 to vector<32x1xf32>
    %188 = arith.mulf %186, %187 : vector<32x1xf32>
    %189 = vector.extract_strided_slice %188 {offsets = [0, 0], sizes = [16, 1], strides = [1, 1]} : vector<32x1xf32> to vector<16x1xf32>
    %190 = vector.extract_strided_slice %188 {offsets = [16, 0], sizes = [16, 1], strides = [1, 1]} : vector<32x1xf32> to vector<16x1xf32>
    %191 = arith.mulf %189, %189 : vector<16x1xf32>
    %192 = arith.subf %190, %191 : vector<16x1xf32>
    %cst_42 = arith.constant 0.000000e+00 : f32
    %193 = vector.broadcast %cst_42 : f32 to vector<16x1xf32>
    %194 = arith.maximumf %192, %193 : vector<16x1xf32>
    %cst_43 = arith.constant 9.99999974E-6 : f32
    %195 = vector.broadcast %cst_43 : f32 to vector<16x1xf32>
    %196 = arith.addf %194, %195 : vector<16x1xf32>
    %197 = math.rsqrt %196 : vector<16x1xf32>
    %198 = arith.mulf %181, %197 : vector<16x1xf32>
    %199 = vector.broadcast %198 : vector<16x1xf32> to vector<16x32xf32>
    %200 = arith.mulf %180, %199 : vector<16x32xf32>
    %201 = arith.mulf %189, %198 : vector<16x1xf32>
    %202 = arith.subf %182, %201 : vector<16x1xf32>
    %203 = vector.broadcast %202 : vector<16x1xf32> to vector<16x32xf32>
    %204 = arith.addf %200, %203 : vector<16x32xf32>
    %cst_44 = arith.constant 0.000000e+00 : f32
    %205 = vector.broadcast %cst_44 : f32 to vector<16x32xf32>
    %206 = arith.maximumf %204, %205 : vector<16x32xf32>
    %c3 = arith.constant 3 : index
    %c0_45 = arith.constant 0 : index
    %c0_46 = arith.constant 0 : index
    %207 = vector.load %arg2[%c3, %c0_45, %c0_46] : memref<4x16x48xbf16, #tpu.memory_space<vmem>>, vector<1x16x48xbf16>
    %208 = vector.shape_cast %207 : vector<1x16x48xbf16> to vector<16x48xbf16>
    %209 = vector.extract_strided_slice %206 {offsets = [0, 31], sizes = [16, 1], strides = [1, 1]} : vector<16x32xf32> to vector<16x1xf32>
    %210 = vector.extract_strided_slice %206 {offsets = [0, 0], sizes = [16, 31], strides = [1, 1]} : vector<16x32xf32> to vector<16x31xf32>
    %211 = tpu.concatenate %209, %210 in 1 : vector<16x1xf32>, vector<16x31xf32> -> vector<16x32xf32>
    %212 = arith.mulf %211, %47 : vector<16x32xf32>
    %213 = vector.extract_strided_slice %206 {offsets = [0, 1], sizes = [16, 31], strides = [1, 1]} : vector<16x32xf32> to vector<16x31xf32>
    %214 = vector.extract_strided_slice %206 {offsets = [0, 0], sizes = [16, 1], strides = [1, 1]} : vector<16x32xf32> to vector<16x1xf32>
    %215 = tpu.concatenate %213, %214 in 1 : vector<16x31xf32>, vector<16x1xf32> -> vector<16x32xf32>
    %216 = arith.mulf %215, %49 : vector<16x32xf32>
    %217 = tpu.concatenate %212, %206, %216 in 0 : vector<16x32xf32>, vector<16x32xf32>, vector<16x32xf32> -> vector<48x32xf32>
    %218 = arith.truncf %217 : vector<48x32xf32> to vector<48x32xbf16>
    %cst_47 = arith.constant dense<0.000000e+00> : vector<16x32xf32>
    %219 = tpu.matmul %208, %218, %cst_47 {dimension_numbers = #tpu.dot_dimension_numbers<[1], [0], [0], [1], [0, 0, 1, 1], [], []>} : vector<16x48xbf16>, vector<48x32xbf16>, vector<16x32xf32> -> vector<16x32xf32>
    %220 = vector.extract_strided_slice %50 {offsets = [0, 8], sizes = [16, 1], strides = [1, 1]} : vector<16x10xf32> to vector<16x1xf32>
    %221 = vector.extract_strided_slice %50 {offsets = [0, 9], sizes = [16, 1], strides = [1, 1]} : vector<16x10xf32> to vector<16x1xf32>
    %222 = arith.mulf %219, %219 : vector<16x32xf32>
    %223 = tpu.concatenate %219, %222 in 0 : vector<16x32xf32>, vector<16x32xf32> -> vector<32x32xf32>
    %cst_48 = arith.constant dense<0.000000e+00> : vector<32xf32>
    %224 = vector.multi_reduction <add>, %223, %cst_48 [1] : vector<32x32xf32> to vector<32xf32>
    %225 = vector.shape_cast %224 : vector<32xf32> to vector<32x1xf32>
    %cst_49 = arith.constant 3.125000e-02 : f32
    %226 = vector.broadcast %cst_49 : f32 to vector<32x1xf32>
    %227 = arith.mulf %225, %226 : vector<32x1xf32>
    %228 = vector.extract_strided_slice %227 {offsets = [0, 0], sizes = [16, 1], strides = [1, 1]} : vector<32x1xf32> to vector<16x1xf32>
    %229 = vector.extract_strided_slice %227 {offsets = [16, 0], sizes = [16, 1], strides = [1, 1]} : vector<32x1xf32> to vector<16x1xf32>
    %230 = arith.mulf %228, %228 : vector<16x1xf32>
    %231 = arith.subf %229, %230 : vector<16x1xf32>
    %cst_50 = arith.constant 0.000000e+00 : f32
    %232 = vector.broadcast %cst_50 : f32 to vector<16x1xf32>
    %233 = arith.maximumf %231, %232 : vector<16x1xf32>
    %cst_51 = arith.constant 9.99999974E-6 : f32
    %234 = vector.broadcast %cst_51 : f32 to vector<16x1xf32>
    %235 = arith.addf %233, %234 : vector<16x1xf32>
    %236 = math.rsqrt %235 : vector<16x1xf32>
    %237 = arith.mulf %220, %236 : vector<16x1xf32>
    %238 = vector.broadcast %237 : vector<16x1xf32> to vector<16x32xf32>
    %239 = arith.mulf %219, %238 : vector<16x32xf32>
    %240 = arith.mulf %228, %237 : vector<16x1xf32>
    %241 = arith.subf %221, %240 : vector<16x1xf32>
    %242 = vector.broadcast %241 : vector<16x1xf32> to vector<16x32xf32>
    %243 = arith.addf %239, %242 : vector<16x32xf32>
    %244 = arith.addf %243, %167 : vector<16x32xf32>
    %cst_52 = arith.constant 0.000000e+00 : f32
    %245 = vector.broadcast %cst_52 : f32 to vector<16x32xf32>
    %246 = arith.maximumf %244, %245 : vector<16x32xf32>
    %cst_53 = arith.constant dense<0.000000e+00> : vector<32xf32>
    %247 = vector.multi_reduction <add>, %246, %cst_53 [0] : vector<16x32xf32> to vector<32xf32>
    %248 = vector.shape_cast %247 : vector<32xf32> to vector<1x32xf32>
    %249 = tpu.iota {dimensions = array<i32: 0>} : vector<2x32xi32>
    %250 = tpu.iota {dimensions = array<i32: 1>} : vector<2x32xi32>
    %c16_i32_54 = arith.constant 16 : i32
    %251 = vector.broadcast %c16_i32_54 : i32 to vector<2x32xi32>
    %252 = arith.muli %249, %251 : vector<2x32xi32>
    %253 = arith.cmpi sge, %250, %252 : vector<2x32xi32>
    %c1_i32_55 = arith.constant 1 : i32
    %254 = vector.broadcast %c1_i32_55 : i32 to vector<2x32xi32>
    %255 = arith.addi %249, %254 : vector<2x32xi32>
    %c16_i32_56 = arith.constant 16 : i32
    %256 = vector.broadcast %c16_i32_56 : i32 to vector<2x32xi32>
    %257 = arith.muli %255, %256 : vector<2x32xi32>
    %258 = arith.cmpi slt, %250, %257 : vector<2x32xi32>
    %259 = arith.andi %253, %258 : vector<2x32xi1>
    %260 = arith.extui %259 : vector<2x32xi1> to vector<2x32xi32>
    %261 = arith.sitofp %260 : vector<2x32xi32> to vector<2x32xf32>
    %262 = vector.broadcast %248 : vector<1x32xf32> to vector<2x32xf32>
    %263 = arith.mulf %261, %262 : vector<2x32xf32>
    %cst_57 = arith.constant dense<0.000000e+00> : vector<2xf32>
    %264 = vector.multi_reduction <add>, %263, %cst_57 [1] : vector<2x32xf32> to vector<2xf32>
    %265 = vector.shape_cast %264 : vector<2xf32> to vector<2x1xf32>
    %cst_58 = arith.constant 3.906250e-03 : f32
    %266 = vector.broadcast %cst_58 : f32 to vector<2x1xf32>
    %267 = arith.mulf %265, %266 : vector<2x1xf32>
    %c0_59 = arith.constant 0 : index
    %c0_60 = arith.constant 0 : index
    %268 = vector.load %arg4[%c0_59, %c0_60] : memref<2x12xf32, #tpu.memory_space<vmem>>, vector<2x12xf32>
    %269 = vector.extract_strided_slice %268 {offsets = [0, 0], sizes = [1, 12], strides = [1, 1]} : vector<2x12xf32> to vector<1x12xf32>
    %270 = vector.broadcast %267 : vector<2x1xf32> to vector<2x12xf32>
    %271 = vector.broadcast %269 : vector<1x12xf32> to vector<2x12xf32>
    %272 = arith.mulf %270, %271 : vector<2x12xf32>
    %273 = vector.extract_strided_slice %268 {offsets = [1, 0], sizes = [1, 12], strides = [1, 1]} : vector<2x12xf32> to vector<1x12xf32>
    %274 = vector.broadcast %273 : vector<1x12xf32> to vector<2x12xf32>
    %275 = arith.addf %272, %274 : vector<2x12xf32>
    %cst_61 = arith.constant dense<0xFF800000> : vector<2xf32>
    %276 = vector.multi_reduction <maximumf>, %275, %cst_61 [1] : vector<2x12xf32> to vector<2xf32>
    %277 = vector.shape_cast %276 : vector<2xf32> to vector<2x1xf32>
    %278 = vector.broadcast %277 : vector<2x1xf32> to vector<2x12xf32>
    %279 = arith.subf %275, %278 : vector<2x12xf32>
    %280 = math.exp %279 : vector<2x12xf32>
    %cst_62 = arith.constant dense<0.000000e+00> : vector<2xf32>
    %281 = vector.multi_reduction <add>, %280, %cst_62 [1] : vector<2x12xf32> to vector<2xf32>
    %282 = vector.shape_cast %281 : vector<2xf32> to vector<2x1xf32>
    %283 = math.log %282 : vector<2x1xf32>
    %284 = arith.addf %283, %277 : vector<2x1xf32>
    %285 = vector.broadcast %284 : vector<2x1xf32> to vector<2x12xf32>
    %286 = arith.subf %275, %285 : vector<2x12xf32>
    %c0_63 = arith.constant 0 : index
    %c0_64 = arith.constant 0 : index
    %287 = vector.load %arg5[%c0_63, %c0_64] : memref<2x12xf32, #tpu.memory_space<vmem>>, vector<2x12xf32>
    tpu.vector_store %arg5[%c0_63, %c0_64], %286 {strides = array<i32>} : memref<2x12xf32, #tpu.memory_space<vmem>>, vector<2x12xf32>,
    return
  }
}

</mosaic_0001>

<bundles_post_ra>
// kernel: resnet_forward.1
= control target key start
LH: loop header
LB: loop body
LE: loop exit
PB: predicated region body
PF: predicated region fallthrough
CT: control target
= control target key end

     0   :  { %10 = vsyncpa [#allocation3], 0  ;;  %s1455_s0 = inlined_call_operand.vmem [shape: f32[8,32], index: 0, kind: input, shape index: {}]   ;;  %s1456_s1 = inlined_call_operand.hbm [shape: bf16[16,24], index: 1, kind: input, shape index: {}]   ;;  %s1457_s2 = inlined_call_operand.vmem [shape: bf16[4,16,48], index: 2, kind: input, shape index: {}]   ;;  %s1458_s3 = inlined_call_operand.hbm [shape: f32[16,10], index: 3, kind: input, shape index: {}]   ;;  %s1459_s4 = inlined_call_operand.vmem [shape: f32[2,12], index: 4, kind: input, shape index: {}]   ;;  %s1460_s5 = inlined_call_operand.hbm [shape: f32[2,12], index: 5, kind: output, shape index: {}]  }
   0x1   :  { %11 = vsyncpa [#allocation6], 0 }
   0x2   :  { %12 = vsyncpa [#allocation4], 0  ;;  %s1143_s18 = smov [#allocation2]   ;;  %s1071_s22 = scalar_lea.hbm %s1456_s1, 128 }
   0x3   :  { %s20_s19 = sshll.u32 %s1143_s18, 4  ;;  %p1072_p0 = scmp.ne.s32.totalorder %s1456_s1, %s1071_s22  ;;  %s21_s19 = int_to_ptr.vmem [resolvable:$true] %s20_s19 }
   0x4   :  { %p1075_p1 = scmp.lt.u32.totalorder %s1071_s22, %s1456_s1 }
   0x6   :  { %p1077_p2 = pnand %p1075_p1, %p1072_p0 }
   0x8   :  { %1080 = shalt.err (!%p1077_p2)
}
   0x9   :  { %s1081_s27 = scalar_lea.vmem %s21_s19, 128  ;;  %p1086_p4 = scmp.lt.s32.totalorder %s21_s19, %s21_s19 }
   0xa   :  { %p1082_p3 = scmp.ne.s32.totalorder %s21_s19, %s1081_s27  ;;  %p1087_p5 = scmp.lt.s32.totalorder %s1081_s27, %s1081_s27 }
   0xc   :  { %p1088_p6 = por %p1087_p5, %p1086_p4 }
   0xe   :  { %p1089_p7 = pnand %p1088_p6, %p1082_p3 }
  0x10   :  { %1092 = shalt.err (!%p1089_p7)
}
  0x11   :  { %s1144_s28 = smov 64   ;;  %s1145_s29 = smov 4  }
  0x12   :  { %26 = dma.hbm_to_vmem [thread:$0]  %s1456_s1, 128, %s21_s19, [#allocation3], %s1144_s28, %s1144_s28, %s1145_s29  }
  0x13   :  { %s1146_s7 = smov [#allocation5]   ;;  %s1093_s11 = scalar_lea.hbm %s1458_s3, 256 }
  0x14   :  { %s34_s8 = sshll.u32 %s1146_s7, 4  ;;  %p1094_p8 = scmp.ne.s32.totalorder %s1458_s3, %s1093_s11  ;;  %s35_s8 = int_to_ptr.vmem [resolvable:$true] %s34_s8 }
  0x15   :  { %p1097_p9 = scmp.lt.u32.totalorder %s1093_s11, %s1458_s3 }
  0x17   :  { %p1099_p10 = pnand %p1097_p9, %p1094_p8 }
  0x19   :  { %1102 = shalt.err (!%p1099_p10)
}
  0x1a   :  { %s1103_s16 = scalar_lea.vmem %s35_s8, 256  ;;  %p1108_p12 = scmp.lt.s32.totalorder %s35_s8, %s35_s8 }
  0x1b   :  { %p1104_p11 = scmp.ne.s32.totalorder %s35_s8, %s1103_s16  ;;  %p1109_p13 = scmp.lt.s32.totalorder %s1103_s16, %s1103_s16 }
  0x1d   :  { %p1110_p0 = por %p1109_p13, %p1108_p12 }
  0x1f   :  { %p1111_p1 = pnand %p1110_p0, %p1104_p11 }
  0x21   :  { %1114 = shalt.err (!%p1111_p1)
}
  0x22   :  { %s1147_s1 = smov 128   ;;  %s1148_s17 = smov 8  }
  0x23   :  { %40 = dma.hbm_to_vmem [thread:$0]  %s1458_s3, 256, %s35_s8, [#allocation6], %s1147_s1, %s1147_s1, %s1148_s17  }
  0x24   :  { %1137 = dma.done.wait [#allocation3], 128  }
  0x25   :  { %1138 = vsyncadd [#allocation3], 4294967168 }
  0x26   :  { %1139 = dma.done.wait [#allocation6], 256  }
  0x27   :  { %1140 = vsyncadd [#allocation6], 4294967040  ;;  %v1149_v0 = vmov 0.0   ;;  %v50_v1 = vld [vmem:[%s1455_s0] sm:$0xff]  ;;  %s1150_s22 = smov 127   ;;  %s1151_s23 = smov 97   ;;  %v51_v2 = vlaneseq }
  0x28   :  { %956 = vmatprep.subr.bf16.mxu0 %v1149_v0  ;;  %964 = vmatprep.subr.bf16.mxu1 %v1149_v0  ;;  %vm1152_vm0 = vmmov 0   ;;  %s1153_s3 = smov 31   ;;  %s1154_s24 = smov 1   ;;  %vm91_vm3 = vcmask 252928   ;;  %vm82_vm4 = vcmask 7168   ;;  %vm105_vm5 = vcmask 1043456  }
  0x29   :  { %85 = vrot.lane.b32.xlu1 %v50_v1, %s1150_s22  ;;  %76 = vrot.lane.b32.xlu0 %v50_v1, %s1151_s23  ;;  %v1234_v3 = vand.u32 127, %v51_v2  ;;  %v1042_v18 = vld [vmem:[#allocation2] sm:$0xff]   ;;  %vm101_vm6 = vcmask 195584   ;;  %vm152_vm7 = vcmask 261120   ;;  %v1155_v29 = vmov 0   ;;  %v1255_v47 = vld [vmem:[#allocation5] sm:$0xff] }
  0x2a   :  { %960 = vmatprep.mubr.msk.bf16.mxu0 %vm1152_vm0, %v1149_v0  ;;  %970 = vmatprep.mubr.msk.bf16.mxu1 %vm1152_vm0, %v1149_v0  ;;  %v1156_v46 = vmov 1   ;;  %v1258_v50 = vld [vmem:[#allocation5 + $0x8] sm:$0xff]  ;;  %vm263_vm8 = vcmask 392192   ;;  %vm871_vm12 = vcmask 254976   ;;  %vm887_vm13 = vcmask 91136  }
  0x2b   :  { %v57_v4 = vand.u32 15, %v1234_v3  ;;  %1027 = vset.pattern.permute.xlu1 %v1155_v29  ;;  %1028 = vset.pattern.permute.xlu0 %v1156_v46  ;;  %v1043_v29 = vld [vmem:[%s1457_s2] sm:$0xff]  }
  0x2d   :  { %88 = vrot.lane.b32.xlu1 %v50_v1, %s1153_s3  ;;  %79 = vrot.lane.b32.xlu0 %v50_v1, %s1154_s24  ;;  %vm68_vm1 = vcmp.ne.s32.totalorder %v57_v4, 15  ;;  %vm65_vm2 = vcmp.ne.s32.totalorder %v57_v4, 0 }
  0x2e   :  { %v1238_v7 = vsel %vm68_vm1, 1.0, %v1149_v0  ;;  %v1241_v8 = vsel %vm65_vm2, 1.0, %v1149_v0 }
  0x9b   :  { %v86_v5 = vpop.permute.xlu1 %85  ;;  %v77_v6 = vpop.permute.xlu0 %76 }
  0x9f   :  { %v89_v9 = vpop.permute.xlu1 %88  ;;  %v80_v10 = vpop.permute.xlu0 %79 }
  0xa0   :  { %v92_v11 = vsel %vm91_vm3, %v86_v5, %v89_v9  ;;  %v83_v12 = vsel %vm82_vm4, %v77_v6, %v80_v10 }
  0xa1   :  { %v93_v13 = vmul.f32 %v1238_v7, %v92_v11  ;;  %v84_v14 = vmul.f32 %v1241_v8, %v83_v12 }
  0xa3   :  { %v94_v15 = vpack.c.bf16 %v50_v1, %v84_v14  ;;  %v95_v16 = vpack.c.bf16 %v93_v13, %v93_v13 }
  0xa5   :  { %957 = vmatpush3.bf16.msra.mxu0 %v94_v15  ;;  %v107_v17 = vsel %vm105_vm5, %v95_v16, 0 }
  0xa6   :  { %958 = vmatprep.subr.bf16.mxu0 %v1149_v0 }
  0xa9   :  { %959 = vmatpush3.bf16.msra.mxu0 %v107_v17 }
  0xaa   :  { %974 = vmatprep.subr.bf16.mxu0 %v1149_v0 }
  0xac   :  { %961 = vmatmul.mubr.msk.bf16.vlgmr.msra.gmra.mrb[0].mxu0 %vm101_vm6, %v1042_v18 }
  0xad   :  { %980 = vmatprep.mubr.msk.bf16.mxu0 %vm1152_vm0, %v1149_v0 }
 0x17f   :  { %v143_v19 = vpop.f32.mrb[0].mxu0 }
 0x180   :  { %v962_v20 = vpop.f32.mrb[1].mxu0  ;;  %v153_v21 = vsel %vm152_vm7, %v143_v19, 0.0  ;;  %v150_v22 = vmul.f32 %v143_v19, %v143_v19 }
 0x181   :  { %154 = vadd.xlane.f32.xlu0 %v153_v21  ;;  %v146_v23 = vpop.f32.mrb[2].mxu0 }
 0x182   :  { %v963_v24 = vpop.f32.mrb[3].mxu0  ;;  %v156_v25 = vsel %vm152_vm7, %v146_v23, 0.0  ;;  %v159_v26 = vsel %vm152_vm7, %v150_v22, 0.0  ;;  %v151_v27 = vmul.f32 %v146_v23, %v146_v23 }
 0x183   :  { %157 = vadd.xlane.f32.xlu1 %v156_v25 }
 0x184   :  { %v162_v28 = vsel %vm152_vm7, %v151_v27, 0.0 }
 0x185   :  { %160 = vadd.xlane.f32.xlu0 %v159_v26 }
 0x189   :  { %163 = vadd.xlane.f32.xlu0 %v162_v28 }
 0x20e   :  { %v155_v30 = vpop.xlane.xlu0 %154 }
 0x20f   :  { %v165_v31 = vmul.f32 0.03125, %v155_v30 }
 0x210   :  { %v158_v32 = vpop.xlane.xlu1 %157 }
 0x211   :  { %v169_v34 = vmul.f32 %v165_v31, %v165_v31  ;;  %v166_v35 = vmul.f32 0.03125, %v158_v32 }
 0x212   :  { %v161_v33 = vpop.xlane.xlu0 %160 }
 0x213   :  { %v167_v36 = vmul.f32 0.03125, %v161_v33  ;;  %v170_v39 = vmul.f32 %v166_v35, %v166_v35 }
 0x215   :  { %v171_v37 = vsub.f32 %v167_v36, %v169_v34 }
 0x216   :  { %v164_v38 = vpop.xlane.xlu0 %163 }
 0x217   :  { %v173_v40 = vmax.f32 %v171_v37, 0.0  ;;  %v168_v41 = vmul.f32 0.03125, %v164_v38 }
 0x219   :  { %v175_v42 = vadd.f32 1e-05, %v173_v40  ;;  %v172_v43 = vsub.f32 %v168_v41, %v170_v39  ;;  %v1157_v40 = vmov 2  }
 0x21b   :  { %1047 = vrsqrt.f32 %v175_v42  ;;  %v174_v44 = vmax.f32 %v172_v43, 0.0 }
 0x21d   :  { %v176_v45 = vadd.f32 1e-05, %v174_v44 }
 0x21f   :  { %1049 = vrsqrt.f32 %v176_v45 }
 0x225   :  { %v1048_v48 = vpop.eup %1047 }
 0x226   :  { %v179_v49 = vmul.f32 %v1048_v48, %v1255_v47 }
 0x228   :  { %v193_v51 = vmul.f32 %v179_v49, %v165_v31 }
 0x229   :  { %v1050_v52 = vpop.eup %1049 }
 0x22a   :  { %197 = vrot.lane.b32.xlu1 %v193_v51, %s1154_s24  ;;  %v180_v53 = vmul.f32 %v1050_v52, %v1258_v50 }
 0x22c   :  { %v194_v54 = vmul.f32 %v180_v53, %v166_v35 }
 0x22e   :  { %183 = vperm.xlu1 %1027, %v179_v49   ;;  %199 = vrot.lane.b32.xlu0 %v194_v54, %s1154_s24 }
 0x232   :  { %188 = vperm.xlu1 %1027, %v180_v53  }
 0x236   :  { %1029 = vset.pattern.permute.xlu1 %v1156_v46 }
 0x29c   :  { %v198_v55 = vpop.permute.xlu1 %197 }
 0x29d   :  { %v203_v56 = vsub.f32 %v1255_v47, %v198_v55 }
 0x29f   :  { %207 = vperm.xlu0 %1028, %v203_v56  }
 0x2a0   :  { %v200_v57 = vpop.permute.xlu0 %199 }
 0x2a1   :  { %v204_v58 = vsub.f32 %v1258_v50, %v200_v57 }
 0x2a3   :  { %212 = vperm.xlu1 %1029, %v204_v58   ;;  %1031 = vset.pattern.permute.xlu0 %v1157_v40 }
 0x2a7   :  { %1030 = vset.pattern.permute.xlu1 %v1157_v40 }
 0x2ad   :  { %v184_v59 = vpop.permute.xlu1 %183 }
 0x2ae   :  { %v191_v60 = vmul.f32 %v184_v59, %v143_v19 }
 0x2b1   :  { %v189_v61 = vpop.permute.xlu1 %188 }
 0x2b2   :  { %v192_v1 = vmul.f32 %v189_v61, %v146_v23 }
 0x31e   :  { %v208_v62 = vpop.permute.xlu0 %207 }
 0x31f   :  { %v215_v63 = vadd.f32 %v208_v62, %v191_v60 }
 0x321   :  { %v1265_v4 = vmax.f32 %v215_v63, 0.0 }
 0x322   :  { %v213_v5 = vpop.permute.xlu1 %212 }
 0x323   :  { %v216_v6 = vadd.f32 %v213_v5, %v192_v1  ;;  %223 = vrot.lane.b32.xlu1 %v1265_v4, %s1151_s23  ;;  %v1158_v5 = vmov 3  }
 0x325   :  { %v1269_v9 = vmax.f32 %v216_v6, 0.0 }
 0x327   :  { %225 = vrot.lane.b32.xlu0 %v1269_v9, %s1151_s23  ;;  %229 = vrot.lane.b32.xlu1 %v1265_v4, %s1154_s24  ;;  %v256_v24 = vpack.c.bf16 %v1269_v9, %v1265_v4 }
 0x32b   :  { %231 = vrot.lane.b32.xlu0 %v1269_v9, %s1154_s24  ;;  %239 = vrot.lane.b32.xlu1 %v1265_v4, %s1150_s22 }
 0x32f   :  { %241 = vrot.lane.b32.xlu0 %v1269_v9, %s1150_s22  ;;  %245 = vrot.lane.b32.xlu1 %v1265_v4, %s1153_s3 }
 0x333   :  { %247 = vrot.lane.b32.xlu0 %v1269_v9, %s1153_s3 }
 0x395   :  { %v224_v10 = vpop.permute.xlu1 %223 }
 0x399   :  { %v230_v11 = vpop.permute.xlu1 %229  ;;  %v226_v12 = vpop.permute.xlu0 %225 }
 0x39a   :  { %v235_v13 = vsel %vm82_vm4, %v224_v10, %v230_v11 }
 0x39b   :  { %v237_v17 = vmul.f32 %v1241_v8, %v235_v13 }
 0x39d   :  { %v240_v14 = vpop.permute.xlu1 %239  ;;  %v232_v15 = vpop.permute.xlu0 %231 }
 0x39e   :  { %v236_v16 = vsel %vm82_vm4, %v226_v12, %v232_v15 }
 0x39f   :  { %v238_v18 = vmul.f32 %v1241_v8, %v236_v16 }
 0x3a1   :  { %v246_v19 = vpop.permute.xlu1 %245  ;;  %v242_v20 = vpop.permute.xlu0 %241  ;;  %v255_v21 = vpack.c.bf16 %v238_v18, %v237_v17 }
 0x3a2   :  { %v251_v22 = vsel %vm91_vm3, %v240_v14, %v246_v19 }
 0x3a3   :  { %965 = vmatpush3.bf16.msra.mxu1 %v255_v21  ;;  %v253_v26 = vmul.f32 %v1238_v7, %v251_v22 }
 0x3a4   :  { %966 = vmatprep.subr.bf16.mxu1 %v1149_v0 }
 0x3a5   :  { %v248_v23 = vpop.permute.xlu0 %247 }
 0x3a6   :  { %v252_v25 = vsel %vm91_vm3, %v242_v20, %v248_v23 }
 0x3a7   :  { %v254_v27 = vmul.f32 %v1238_v7, %v252_v25  ;;  %967 = vmatpush3.bf16.msra.mxu1 %v256_v24 }
 0x3a8   :  { %968 = vmatprep.subr.bf16.mxu1 %v1149_v0 }
 0x3a9   :  { %v257_v28 = vpack.c.bf16 %v254_v27, %v253_v26 }
 0x3ab   :  { %969 = vmatpush3.bf16.msra.mxu1 %v257_v28 }
 0x3ac   :  { %984 = vmatprep.subr.bf16.mxu1 %v1149_v0 }
 0x3ae   :  { %971 = vmatmul.mubr.msk.bf16.vlgmr.msra.gmra.mrb[0].mxu1 %vm263_vm8, %v1043_v29 }
 0x3af   :  { %990 = vmatprep.mubr.msk.bf16.mxu1 %vm1152_vm0, %v1149_v0 }
 0x481   :  { %v301_v30 = vpop.f32.mrb[0].mxu1 }
 0x482   :  { %v972_v31 = vpop.f32.mrb[1].mxu1  ;;  %v310_v32 = vsel %vm152_vm7, %v301_v30, 0.0  ;;  %v308_v37 = vmul.f32 %v301_v30, %v301_v30 }
 0x483   :  { %311 = vadd.xlane.f32.xlu1 %v310_v32  ;;  %v304_v33 = vpop.f32.mrb[2].mxu1 }
 0x484   :  { %v973_v34 = vpop.f32.mrb[3].mxu1  ;;  %v313_v35 = vsel %vm152_vm7, %v304_v33, 0.0  ;;  %v309_v36 = vmul.f32 %v304_v33, %v304_v33  ;;  %v316_v39 = vsel %vm152_vm7, %v308_v37, 0.0 }
 0x485   :  { %314 = vadd.xlane.f32.xlu0 %v313_v35 }
 0x486   :  { %v319_v38 = vsel %vm152_vm7, %v309_v36, 0.0 }
 0x487   :  { %320 = vadd.xlane.f32.xlu1 %v319_v38 }
 0x489   :  { %317 = vadd.xlane.f32.xlu0 %v316_v39 }
 0x510   :  { %v312_v41 = vpop.xlane.xlu1 %311 }
 0x511   :  { %v322_v43 = vmul.f32 0.03125, %v312_v41 }
 0x512   :  { %v315_v42 = vpop.xlane.xlu0 %314 }
 0x513   :  { %v323_v44 = vmul.f32 0.03125, %v315_v42  ;;  %v326_v51 = vmul.f32 %v322_v43, %v322_v43  ;;  %v1044_v42 = vld [vmem:[%s1457_s2 + $0x8] sm:$0xff]  }
 0x514   :  { %v321_v45 = vpop.xlane.xlu1 %320 }
 0x515   :  { %v327_v46 = vmul.f32 %v323_v44, %v323_v44  ;;  %v325_v48 = vmul.f32 0.03125, %v321_v45 }
 0x516   :  { %v318_v49 = vpop.xlane.xlu0 %317 }
 0x517   :  { %v329_v52 = vsub.f32 %v325_v48, %v327_v46  ;;  %v324_v53 = vmul.f32 0.03125, %v318_v49 }
 0x519   :  { %v331_v54 = vmax.f32 %v329_v52, 0.0  ;;  %v328_v55 = vsub.f32 %v324_v53, %v326_v51 }
 0x51b   :  { %v333_v56 = vadd.f32 1e-05, %v331_v54  ;;  %v330_v57 = vmax.f32 %v328_v55, 0.0  ;;  %v1159_v55 = vmov 4  }
 0x51d   :  { %1051 = vrsqrt.f32 %v333_v56  ;;  %v332_v58 = vadd.f32 1e-05, %v330_v57 }
 0x51f   :  { %1053 = vrsqrt.f32 %v332_v58 }
 0x527   :  { %v1052_v59 = vpop.eup %1051 }
 0x528   :  { %v337_v60 = vmul.f32 %v1052_v59, %v1258_v50 }
 0x529   :  { %v1054_v61 = vpop.eup %1053 }
 0x52a   :  { %v351_v62 = vmul.f32 %v337_v60, %v323_v44  ;;  %v336_v63 = vmul.f32 %v1054_v61, %v1255_v47 }
 0x52c   :  { %356 = vrot.lane.b32.xlu1 %v351_v62, %s1154_s24  ;;  %v350_v1 = vmul.f32 %v336_v63, %v322_v43 }
 0x52e   :  { %354 = vrot.lane.b32.xlu0 %v350_v1, %s1154_s24 }
 0x530   :  { %340 = vperm.xlu1 %1030, %v336_v63  }
 0x532   :  { %345 = vperm.xlu0 %1031, %v337_v60  }
 0x534   :  { %1032 = vset.pattern.permute.xlu1 %v1158_v5 }
 0x59e   :  { %v357_v11 = vpop.permute.xlu1 %356 }
 0x59f   :  { %v361_v12 = vsub.f32 %v1258_v50, %v357_v11 }
 0x5a0   :  { %v355_v6 = vpop.permute.xlu0 %354 }
 0x5a1   :  { %v360_v10 = vsub.f32 %v1255_v47, %v355_v6 }
 0x5a3   :  { %364 = vperm.xlu1 %1032, %v360_v10  }
 0x5a7   :  { %369 = vperm.xlu1 %1032, %v361_v12  }
 0x5ab   :  { %1033 = vset.pattern.permute.xlu1 %v1159_v55 }
 0x5af   :  { %v341_v13 = vpop.permute.xlu1 %340 }
 0x5b0   :  { %v348_v14 = vmul.f32 %v341_v13, %v301_v30 }
 0x5b1   :  { %v346_v15 = vpop.permute.xlu0 %345 }
 0x5b2   :  { %v349_v18 = vmul.f32 %v346_v15, %v304_v33  ;;  %v1160_v15 = vmov 5  }
 0x5b3   :  { %1034 = vset.pattern.permute.xlu0 %v1160_v15 }
 0x622   :  { %v365_v16 = vpop.permute.xlu1 %364 }
 0x623   :  { %v372_v17 = vadd.f32 %v365_v16, %v348_v14 }
 0x625   :  { %v374_v19 = vmax.f32 %v372_v17, 0.0 }
 0x626   :  { %v370_v20 = vpop.permute.xlu1 %369 }
 0x627   :  { %v373_v21 = vadd.f32 %v370_v20, %v349_v18  ;;  %381 = vrot.lane.b32.xlu0 %v374_v19, %s1151_s23 }
 0x629   :  { %v375_v22 = vmax.f32 %v373_v21, 0.0 }
 0x62b   :  { %387 = vrot.lane.b32.xlu0 %v374_v19, %s1154_s24  ;;  %383 = vrot.lane.b32.xlu1 %v375_v22, %s1151_s23  ;;  %v414_v23 = vpack.c.bf16 %v375_v22, %v374_v19 }
 0x62f   :  { %397 = vrot.lane.b32.xlu0 %v374_v19, %s1150_s22  ;;  %389 = vrot.lane.b32.xlu1 %v375_v22, %s1154_s24 }
 0x633   :  { %403 = vrot.lane.b32.xlu0 %v374_v19, %s1153_s3  ;;  %399 = vrot.lane.b32.xlu1 %v375_v22, %s1150_s22 }
 0x637   :  { %405 = vrot.lane.b32.xlu1 %v375_v22, %s1153_s3 }
 0x699   :  { %v382_v24 = vpop.permute.xlu0 %381 }
 0x69d   :  { %v388_v25 = vpop.permute.xlu0 %387  ;;  %v384_v26 = vpop.permute.xlu1 %383 }
 0x69e   :  { %v393_v27 = vsel %vm82_vm4, %v382_v24, %v388_v25 }
 0x69f   :  { %v395_v31 = vmul.f32 %v1241_v8, %v393_v27 }
 0x6a1   :  { %v398_v28 = vpop.permute.xlu0 %397  ;;  %v390_v29 = vpop.permute.xlu1 %389 }
 0x6a2   :  { %v394_v30 = vsel %vm82_vm4, %v384_v26, %v390_v29 }
 0x6a3   :  { %v396_v32 = vmul.f32 %v1241_v8, %v394_v30 }
 0x6a5   :  { %v413_v33 = vpack.c.bf16 %v396_v32, %v395_v31  ;;  %v404_v34 = vpop.permute.xlu0 %403  ;;  %v400_v35 = vpop.permute.xlu1 %399 }
 0x6a6   :  { %v409_v36 = vsel %vm91_vm3, %v398_v28, %v404_v34 }
 0x6a7   :  { %975 = vmatpush3.bf16.msra.mxu0 %v413_v33  ;;  %v411_v39 = vmul.f32 %v1238_v7, %v409_v36 }
 0x6a8   :  { %976 = vmatprep.subr.bf16.mxu0 %v1149_v0 }
 0x6a9   :  { %v406_v37 = vpop.permute.xlu1 %405 }
 0x6aa   :  { %v410_v38 = vsel %vm91_vm3, %v400_v35, %v406_v37 }
 0x6ab   :  { %v412_v40 = vmul.f32 %v1238_v7, %v410_v38  ;;  %977 = vmatpush3.bf16.msra.mxu0 %v414_v23 }
 0x6ac   :  { %978 = vmatprep.subr.bf16.mxu0 %v1149_v0 }
 0x6ad   :  { %v415_v41 = vpack.c.bf16 %v412_v40, %v411_v39 }
 0x6af   :  { %979 = vmatpush3.bf16.msra.mxu0 %v415_v41 }
 0x6b0   :  { %994 = vmatprep.subr.bf16.mxu0 %v1149_v0 }
 0x6b2   :  { %981 = vmatmul.mubr.msk.bf16.vlgmr.msra.gmra.mrb[4].mxu0 %vm263_vm8, %v1044_v42 }
 0x6b3   :  { %1000 = vmatprep.mubr.msk.bf16.mxu0 %vm1152_vm0, %v1149_v0 }
 0x785   :  { %v458_v43 = vpop.f32.mrb[4].mxu0 }
 0x786   :  { %v982_v44 = vpop.f32.mrb[5].mxu0  ;;  %v467_v45 = vsel %vm152_vm7, %v458_v43, 0.0  ;;  %v465_v46 = vmul.f32 %v458_v43, %v458_v43 }
 0x787   :  { %468 = vadd.xlane.f32.xlu0 %v467_v45  ;;  %v461_v48 = vpop.f32.mrb[6].mxu0 }
 0x788   :  { %v983_v49 = vpop.f32.mrb[7].mxu0  ;;  %v470_v51 = vsel %vm152_vm7, %v461_v48, 0.0  ;;  %v473_v52 = vsel %vm152_vm7, %v465_v46, 0.0  ;;  %v466_v53 = vmul.f32 %v461_v48, %v461_v48 }
 0x789   :  { %471 = vadd.xlane.f32.xlu1 %v470_v51 }
 0x78a   :  { %v476_v54 = vsel %vm152_vm7, %v466_v53, 0.0 }
 0x78b   :  { %474 = vadd.xlane.f32.xlu0 %v473_v52 }
 0x78f   :  { %477 = vadd.xlane.f32.xlu0 %v476_v54 }
 0x814   :  { %v469_v56 = vpop.xlane.xlu0 %468 }
 0x815   :  { %v479_v57 = vmul.f32 0.03125, %v469_v56 }
 0x816   :  { %v472_v58 = vpop.xlane.xlu1 %471 }
 0x817   :  { %v483_v60 = vmul.f32 %v479_v57, %v479_v57  ;;  %v480_v61 = vmul.f32 0.03125, %v472_v58 }
 0x818   :  { %v475_v59 = vpop.xlane.xlu0 %474 }
 0x819   :  { %v481_v62 = vmul.f32 0.03125, %v475_v59  ;;  %v484_v5 = vmul.f32 %v480_v61, %v480_v61 }
 0x81b   :  { %v485_v63 = vsub.f32 %v481_v62, %v483_v60 }
 0x81c   :  { %v478_v1 = vpop.xlane.xlu0 %477 }
 0x81d   :  { %v487_v6 = vmax.f32 %v485_v63, 0.0  ;;  %v482_v10 = vmul.f32 0.03125, %v478_v1 }
 0x81f   :  { %v489_v11 = vadd.f32 1e-05, %v487_v6  ;;  %v486_v12 = vsub.f32 %v482_v10, %v484_v5 }
 0x821   :  { %1055 = vrsqrt.f32 %v489_v11  ;;  %v488_v13 = vmax.f32 %v486_v12, 0.0  ;;  %v1161_v11 = vmov 6  }
 0x823   :  { %v490_v14 = vadd.f32 1e-05, %v488_v13 }
 0x825   :  { %1057 = vrsqrt.f32 %v490_v14 }
 0x82b   :  { %v1056_v16 = vpop.eup %1055 }
 0x82c   :  { %v493_v17 = vmul.f32 %v1056_v16, %v1255_v47 }
 0x82e   :  { %v507_v18 = vmul.f32 %v493_v17, %v479_v57  ;;  %v1045_v57 = vld [vmem:[%s1457_s2 + $0x10] sm:$0xff]  }
 0x82f   :  { %v1058_v19 = vpop.eup %1057 }
 0x830   :  { %511 = vrot.lane.b32.xlu1 %v507_v18, %s1154_s24  ;;  %v494_v20 = vmul.f32 %v1058_v19, %v1258_v50 }
 0x832   :  { %v508_v21 = vmul.f32 %v494_v20, %v480_v61 }
 0x834   :  { %497 = vperm.xlu1 %1033, %v493_v17   ;;  %513 = vrot.lane.b32.xlu0 %v508_v21, %s1154_s24 }
 0x838   :  { %502 = vperm.xlu1 %1033, %v494_v20  }
 0x83c   :  { %1035 = vset.pattern.permute.xlu1 %v1160_v15 }
 0x8a2   :  { %v512_v22 = vpop.permute.xlu1 %511 }
 0x8a3   :  { %v517_v23 = vsub.f32 %v1255_v47, %v512_v22 }
 0x8a5   :  { %521 = vperm.xlu0 %1034, %v517_v23  }
 0x8a6   :  { %v514_v24 = vpop.permute.xlu0 %513 }
 0x8a7   :  { %v518_v25 = vsub.f32 %v1258_v50, %v514_v24 }
 0x8a9   :  { %526 = vperm.xlu1 %1035, %v518_v25   ;;  %1037 = vset.pattern.permute.xlu0 %v1161_v11 }
 0x8ad   :  { %1036 = vset.pattern.permute.xlu1 %v1161_v11 }
 0x8b3   :  { %v498_v26 = vpop.permute.xlu1 %497 }
 0x8b4   :  { %v505_v27 = vmul.f32 %v498_v26, %v458_v43 }
 0x8b7   :  { %v503_v28 = vpop.permute.xlu1 %502 }
 0x8b8   :  { %v506_v31 = vmul.f32 %v503_v28, %v461_v48 }
 0x924   :  { %v522_v29 = vpop.permute.xlu0 %521 }
 0x925   :  { %v529_v30 = vadd.f32 %v522_v29, %v505_v27 }
 0x927   :  { %v531_v32 = vadd.f32 %v529_v30, %v1265_v4 }
 0x928   :  { %v527_v33 = vpop.permute.xlu1 %526 }
 0x929   :  { %v1350_v34 = vmax.f32 %v531_v32, 0.0  ;;  %v530_v35 = vadd.f32 %v527_v33, %v506_v31 }
 0x92b   :  { %v532_v36 = vadd.f32 %v530_v35, %v1269_v9  ;;  %540 = vrot.lane.b32.xlu1 %v1350_v34, %s1151_s23  ;;  %v1162_v35 = vmov 7  }
 0x92d   :  { %v1355_v37 = vmax.f32 %v532_v36, 0.0 }
 0x92f   :  { %542 = vrot.lane.b32.xlu0 %v1355_v37, %s1151_s23  ;;  %546 = vrot.lane.b32.xlu1 %v1350_v34, %s1154_s24  ;;  %v573_v52 = vpack.c.bf16 %v1355_v37, %v1350_v34 }
 0x933   :  { %548 = vrot.lane.b32.xlu0 %v1355_v37, %s1154_s24  ;;  %556 = vrot.lane.b32.xlu1 %v1350_v34, %s1150_s22 }
 0x937   :  { %558 = vrot.lane.b32.xlu0 %v1355_v37, %s1150_s22  ;;  %562 = vrot.lane.b32.xlu1 %v1350_v34, %s1153_s3 }
 0x93b   :  { %564 = vrot.lane.b32.xlu0 %v1355_v37, %s1153_s3 }
 0x99d   :  { %v541_v4 = vpop.permute.xlu1 %540 }
 0x9a1   :  { %v547_v9 = vpop.permute.xlu1 %546  ;;  %v543_v38 = vpop.permute.xlu0 %542 }
 0x9a2   :  { %v552_v39 = vsel %vm82_vm4, %v541_v4, %v547_v9 }
 0x9a3   :  { %v554_v43 = vmul.f32 %v1241_v8, %v552_v39 }
 0x9a5   :  { %v557_v40 = vpop.permute.xlu1 %556  ;;  %v549_v41 = vpop.permute.xlu0 %548 }
 0x9a6   :  { %v553_v42 = vsel %vm82_vm4, %v543_v38, %v549_v41 }
 0x9a7   :  { %v555_v44 = vmul.f32 %v1241_v8, %v553_v42 }
 0x9a9   :  { %v572_v45 = vpack.c.bf16 %v555_v44, %v554_v43  ;;  %v563_v46 = vpop.permute.xlu1 %562  ;;  %v559_v48 = vpop.permute.xlu0 %558 }
 0x9aa   :  { %v568_v49 = vsel %vm91_vm3, %v557_v40, %v563_v46 }
 0x9ab   :  { %985 = vmatpush3.bf16.msra.mxu1 %v572_v45  ;;  %v570_v54 = vmul.f32 %v1238_v7, %v568_v49 }
 0x9ac   :  { %986 = vmatprep.subr.bf16.mxu1 %v1149_v0 }
 0x9ad   :  { %v565_v51 = vpop.permute.xlu0 %564 }
 0x9ae   :  { %v569_v53 = vsel %vm91_vm3, %v559_v48, %v565_v51 }
 0x9af   :  { %v571_v55 = vmul.f32 %v1238_v7, %v569_v53  ;;  %987 = vmatpush3.bf16.msra.mxu1 %v573_v52 }
 0x9b0   :  { %988 = vmatprep.subr.bf16.mxu1 %v1149_v0 }
 0x9b1   :  { %v574_v56 = vpack.c.bf16 %v571_v55, %v570_v54 }
 0x9b3   :  { %989 = vmatpush3.bf16.msra.mxu1 %v574_v56 }
 0x9b6   :  { %991 = vmatmul.mubr.msk.bf16.vlgmr.msra.gmra.mrb[4].mxu1 %vm263_vm8, %v1045_v57 }
 0xa89   :  { %v617_v58 = vpop.f32.mrb[4].mxu1 }
 0xa8a   :  { %v992_v59 = vpop.f32.mrb[5].mxu1  ;;  %v626_v60 = vsel %vm152_vm7, %v617_v58, 0.0  ;;  %v624_v5 = vmul.f32 %v617_v58, %v617_v58 }
 0xa8b   :  { %627 = vadd.xlane.f32.xlu1 %v626_v60  ;;  %v620_v61 = vpop.f32.mrb[6].mxu1 }
 0xa8c   :  { %v993_v62 = vpop.f32.mrb[7].mxu1  ;;  %v629_v63 = vsel %vm152_vm7, %v620_v61, 0.0  ;;  %v625_v1 = vmul.f32 %v620_v61, %v620_v61  ;;  %v632_v10 = vsel %vm152_vm7, %v624_v5, 0.0 }
 0xa8d   :  { %630 = vadd.xlane.f32.xlu0 %v629_v63 }
 0xa8e   :  { %v635_v6 = vsel %vm152_vm7, %v625_v1, 0.0 }
 0xa8f   :  { %636 = vadd.xlane.f32.xlu1 %v635_v6 }
 0xa91   :  { %633 = vadd.xlane.f32.xlu0 %v632_v10 }
 0xb18   :  { %v628_v12 = vpop.xlane.xlu1 %627 }
 0xb19   :  { %v638_v14 = vmul.f32 0.03125, %v628_v12 }
 0xb1a   :  { %v631_v13 = vpop.xlane.xlu0 %630 }
 0xb1b   :  { %v639_v15 = vmul.f32 0.03125, %v631_v13  ;;  %v642_v20 = vmul.f32 %v638_v14, %v638_v14 }
 0xb1c   :  { %v637_v16 = vpop.xlane.xlu1 %636 }
 0xb1d   :  { %v643_v17 = vmul.f32 %v639_v15, %v639_v15  ;;  %v641_v18 = vmul.f32 0.03125, %v637_v16 }
 0xb1e   :  { %v634_v19 = vpop.xlane.xlu0 %633 }
 0xb1f   :  { %v645_v21 = vsub.f32 %v641_v18, %v643_v17  ;;  %v640_v22 = vmul.f32 0.03125, %v634_v19 }
 0xb21   :  { %v647_v23 = vmax.f32 %v645_v21, 0.0  ;;  %v644_v24 = vsub.f32 %v640_v22, %v642_v20  ;;  %v1163_v22 = vmov 8  }
 0xb23   :  { %v649_v25 = vadd.f32 1e-05, %v647_v23  ;;  %v646_v26 = vmax.f32 %v644_v24, 0.0 }
 0xb25   :  { %1059 = vrsqrt.f32 %v649_v25  ;;  %v648_v27 = vadd.f32 1e-05, %v646_v26 }
 0xb27   :  { %1061 = vrsqrt.f32 %v648_v27 }
 0xb2f   :  { %v1060_v28 = vpop.eup %1059 }
 0xb30   :  { %v653_v29 = vmul.f32 %v1060_v28, %v1258_v50 }
 0xb31   :  { %v1062_v30 = vpop.eup %1061 }
 0xb32   :  { %v667_v31 = vmul.f32 %v653_v29, %v639_v15  ;;  %v652_v32 = vmul.f32 %v1062_v30, %v1255_v47 }
 0xb34   :  { %672 = vrot.lane.b32.xlu1 %v667_v31, %s1154_s24  ;;  %v666_v33 = vmul.f32 %v652_v32, %v638_v14 }
 0xb36   :  { %670 = vrot.lane.b32.xlu0 %v666_v33, %s1154_s24 }
 0xb38   :  { %656 = vperm.xlu1 %1036, %v652_v32  }
 0xb3a   :  { %661 = vperm.xlu0 %1037, %v653_v29  }
 0xb3c   :  { %1038 = vset.pattern.permute.xlu1 %v1162_v35 }
 0xba6   :  { %v673_v9 = vpop.permute.xlu1 %672 }
 0xba7   :  { %v677_v38 = vsub.f32 %v1258_v50, %v673_v9 }
 0xba8   :  { %v671_v36 = vpop.permute.xlu0 %670 }
 0xba9   :  { %v676_v4 = vsub.f32 %v1255_v47, %v671_v36 }
 0xbab   :  { %680 = vperm.xlu1 %1038, %v676_v4  }
 0xbaf   :  { %685 = vperm.xlu1 %1038, %v677_v38  }
 0xbb3   :  { %1039 = vset.pattern.permute.xlu1 %v1163_v22 }
 0xbb7   :  { %v657_v39 = vpop.permute.xlu1 %656 }
 0xbb8   :  { %v664_v40 = vmul.f32 %v657_v39, %v617_v58  ;;  %v1164_v39 = vmov 9  }
 0xbb9   :  { %v662_v41 = vpop.permute.xlu0 %661  ;;  %1040 = vset.pattern.permute.xlu0 %v1164_v39 }
 0xbba   :  { %v665_v44 = vmul.f32 %v662_v41, %v620_v61 }
 0xc2a   :  { %v681_v42 = vpop.permute.xlu1 %680 }
 0xc2b   :  { %v688_v43 = vadd.f32 %v681_v42, %v664_v40 }
 0xc2d   :  { %v690_v45 = vmax.f32 %v688_v43, 0.0 }
 0xc2e   :  { %v686_v46 = vpop.permute.xlu1 %685 }
 0xc2f   :  { %v689_v48 = vadd.f32 %v686_v46, %v665_v44  ;;  %697 = vrot.lane.b32.xlu0 %v690_v45, %s1151_s23 }
 0xc31   :  { %v691_v49 = vmax.f32 %v689_v48, 0.0 }
 0xc33   :  { %703 = vrot.lane.b32.xlu0 %v690_v45, %s1154_s24  ;;  %699 = vrot.lane.b32.xlu1 %v691_v49, %s1151_s23  ;;  %v730_v51 = vpack.c.bf16 %v691_v49, %v690_v45 }
 0xc37   :  { %713 = vrot.lane.b32.xlu0 %v690_v45, %s1150_s22  ;;  %705 = vrot.lane.b32.xlu1 %v691_v49, %s1154_s24 }
 0xc3b   :  { %719 = vrot.lane.b32.xlu0 %v690_v45, %s1153_s3  ;;  %715 = vrot.lane.b32.xlu1 %v691_v49, %s1150_s22 }
 0xc3f   :  { %721 = vrot.lane.b32.xlu1 %v691_v49, %s1153_s3 }
 0xca1   :  { %v698_v52 = vpop.permute.xlu0 %697 }
 0xca5   :  { %v704_v53 = vpop.permute.xlu0 %703  ;;  %v700_v54 = vpop.permute.xlu1 %699 }
 0xca6   :  { %v709_v55 = vsel %vm82_vm4, %v698_v52, %v704_v53 }
 0xca7   :  { %v711_v59 = vmul.f32 %v1241_v8, %v709_v55 }
 0xca9   :  { %v714_v56 = vpop.permute.xlu0 %713  ;;  %v706_v57 = vpop.permute.xlu1 %705 }
 0xcaa   :  { %v710_v58 = vsel %vm82_vm4, %v700_v54, %v706_v57 }
 0xcab   :  { %v712_v60 = vmul.f32 %v1241_v8, %v710_v58  ;;  %v1046_v8 = vld [vmem:[%s1457_s2 + $0x18] sm:$0xff]  }
 0xcad   :  { %v729_v61 = vpack.c.bf16 %v712_v60, %v711_v59  ;;  %v720_v62 = vpop.permute.xlu0 %719  ;;  %v716_v63 = vpop.permute.xlu1 %715 }
 0xcae   :  { %v725_v1 = vsel %vm91_vm3, %v714_v56, %v720_v62 }
 0xcaf   :  { %995 = vmatpush3.bf16.msra.mxu0 %v729_v61  ;;  %v727_v10 = vmul.f32 %v1238_v7, %v725_v1  ;;  %v861_v61 = vshrl.u32 %v51_v2, 7 }
 0xcb0   :  { %996 = vmatprep.subr.bf16.mxu0 %v1149_v0 }
 0xcb1   :  { %v722_v5 = vpop.permute.xlu1 %721  ;;  %v864_v1 = vadd.s32 1, %v861_v61 }
 0xcb2   :  { %v726_v6 = vsel %vm91_vm3, %v716_v63, %v722_v5 }
 0xcb3   :  { %v728_v11 = vmul.f32 %v1238_v7, %v726_v6  ;;  %997 = vmatpush3.bf16.msra.mxu0 %v730_v51 }
 0xcb4   :  { %998 = vmatprep.subr.bf16.mxu0 %v1149_v0 }
 0xcb5   :  { %v731_v12 = vpack.c.bf16 %v728_v11, %v727_v10  ;;  %v862_v10 = vmul.u32 16, %v861_v61  ;;  %v865_v11 = vmul.u32 16, %v864_v1 }
 0xcb7   :  { %999 = vmatpush3.bf16.msra.mxu0 %v731_v12  ;;  %vm863_vm9 = vcmp.ge.s32.totalorder %v1234_v3, %v862_v10  ;;  %vm866_vm10 = vcmp.lt.s32.totalorder %v1234_v3, %v865_v11 }
 0xcb8   :  { %vm867_vm11 = vmand %vm863_vm9, %vm866_vm10 }
 0xcba   :  { %1001 = vmatmul.mubr.msk.bf16.vlgmr.msra.gmra.mrb[8].mxu0 %vm263_vm8, %v1046_v8 }
 0xd8d   :  { %v774_v13 = vpop.f32.mrb[8].mxu0 }
 0xd8e   :  { %v1002_v14 = vpop.f32.mrb[9].mxu0  ;;  %v783_v15 = vsel %vm152_vm7, %v774_v13, 0.0  ;;  %v781_v16 = vmul.f32 %v774_v13, %v774_v13 }
 0xd8f   :  { %784 = vadd.xlane.f32.xlu0 %v783_v15  ;;  %v777_v17 = vpop.f32.mrb[10].mxu0 }
 0xd90   :  { %v1003_v18 = vpop.f32.mrb[11].mxu0  ;;  %v786_v7 = vsel %vm152_vm7, %v777_v17, 0.0  ;;  %v789_v19 = vsel %vm152_vm7, %v781_v16, 0.0  ;;  %v782_v20 = vmul.f32 %v777_v17, %v777_v17 }
 0xd91   :  { %787 = vadd.xlane.f32.xlu1 %v786_v7  ;;  %v876_v18 = vld [vmem:[%s1459_s4] sm:$0x3]  ;;  %v884_v7 = vsub.s32 1, %v861_v61  ;;  %s1165_s4 = smov [#allocation7]  }
 0xd92   :  { %v792_v21 = vsel %vm152_vm7, %v782_v20, 0.0  ;;  %s908_s8 = sshll.u32 %s1165_s4, 4  ;;  %s909_s8 = int_to_ptr.vmem [resolvable:$true] %s908_s8 }
 0xd93   :  { %790 = vadd.xlane.f32.xlu0 %v789_v19  ;;  %v885_v3 = vrot.slane %v876_v18, %v884_v7  ;;  %s1115_s9 = scalar_lea.vmem %s909_s8, 32  ;;  %p1120_p3 = scmp.lt.s32.totalorder %s909_s8, %s909_s8 }
 0xd94   :  { %p1116_p2 = scmp.ne.s32.totalorder %s909_s8, %s1115_s9  ;;  %p1121_p4 = scmp.lt.s32.totalorder %s1115_s9, %s1115_s9 }
 0xd96   :  { %p1122_p5 = por %p1121_p4, %p1120_p3 }
 0xd97   :  { %793 = vadd.xlane.f32.xlu0 %v792_v21 }
 0xd98   :  { %p1123_p6 = pnand %p1122_p5, %p1116_p2 }
 0xe1c   :  { %v785_v23 = vpop.xlane.xlu0 %784 }
 0xe1d   :  { %v795_v24 = vmul.f32 0.03125, %v785_v23 }
 0xe1e   :  { %v788_v25 = vpop.xlane.xlu1 %787 }
 0xe1f   :  { %v799_v27 = vmul.f32 %v795_v24, %v795_v24  ;;  %v796_v28 = vmul.f32 0.03125, %v788_v25 }
 0xe20   :  { %v791_v26 = vpop.xlane.xlu0 %790 }
 0xe21   :  { %v797_v29 = vmul.f32 0.03125, %v791_v26  ;;  %v800_v32 = vmul.f32 %v796_v28, %v796_v28 }
 0xe23   :  { %v801_v30 = vsub.f32 %v797_v29, %v799_v27 }
 0xe24   :  { %v794_v31 = vpop.xlane.xlu0 %793 }
 0xe25   :  { %v803_v33 = vmax.f32 %v801_v30, 0.0  ;;  %v798_v35 = vmul.f32 0.03125, %v794_v31 }
 0xe27   :  { %v805_v36 = vadd.f32 1e-05, %v803_v33  ;;  %v802_v4 = vsub.f32 %v798_v35, %v800_v32 }
 0xe29   :  { %1063 = vrsqrt.f32 %v805_v36  ;;  %v804_v9 = vmax.f32 %v802_v4, 0.0 }
 0xe2b   :  { %v806_v38 = vadd.f32 1e-05, %v804_v9 }
 0xe2d   :  { %1065 = vrsqrt.f32 %v806_v38 }
 0xe33   :  { %v1064_v40 = vpop.eup %1063 }
 0xe34   :  { %v809_v41 = vmul.f32 %v1064_v40, %v1255_v47 }
 0xe36   :  { %v823_v42 = vmul.f32 %v809_v41, %v795_v24 }
 0xe37   :  { %v1066_v43 = vpop.eup %1065 }
 0xe38   :  { %827 = vrot.lane.b32.xlu1 %v823_v42, %s1154_s24  ;;  %v810_v44 = vmul.f32 %v1066_v43, %v1258_v50 }
 0xe3a   :  { %v824_v45 = vmul.f32 %v810_v44, %v796_v28 }
 0xe3c   :  { %813 = vperm.xlu1 %1039, %v809_v41   ;;  %829 = vrot.lane.b32.xlu0 %v824_v45, %s1154_s24 }
 0xe40   :  { %818 = vperm.xlu1 %1039, %v810_v44  }
 0xe44   :  { %1041 = vset.pattern.permute.xlu1 %v1164_v39 }
 0xeaa   :  { %v828_v46 = vpop.permute.xlu1 %827 }
 0xeab   :  { %v833_v48 = vsub.f32 %v1255_v47, %v828_v46 }
 0xead   :  { %837 = vperm.xlu0 %1040, %v833_v48  }
 0xeae   :  { %v830_v49 = vpop.permute.xlu0 %829 }
 0xeaf   :  { %v834_v51 = vsub.f32 %v1258_v50, %v830_v49 }
 0xeb1   :  { %842 = vperm.xlu1 %1041, %v834_v51  }
 0xebb   :  { %v814_v52 = vpop.permute.xlu1 %813 }
 0xebc   :  { %v821_v53 = vmul.f32 %v814_v52, %v774_v13 }
 0xebf   :  { %v819_v54 = vpop.permute.xlu1 %818 }
 0xec0   :  { %v822_v57 = vmul.f32 %v819_v54, %v777_v17  ;;  %v879_v17 = vsub.s32 0, %v861_v61 }
 0xec2   :  { %v880_v19 = vrot.slane %v876_v18, %v879_v17 }
 0xf2c   :  { %v838_v55 = vpop.permute.xlu0 %837 }
 0xf2d   :  { %v845_v56 = vadd.f32 %v838_v55, %v821_v53 }
 0xf2f   :  { %v847_v58 = vadd.f32 %v845_v56, %v1350_v34 }
 0xf30   :  { %v843_v59 = vpop.permute.xlu1 %842 }
 0xf31   :  { %v846_v60 = vadd.f32 %v843_v59, %v822_v57  ;;  %v849_v62 = vmax.f32 %v847_v58, 0.0 }
 0xf33   :  { %v848_v47 = vadd.f32 %v846_v60, %v1355_v37  ;;  %v851_v50 = vsel %vm152_vm7, %v849_v62, 0.0  ;;  %v936_v37 = vsel %vm867_vm11, 1.0, %v1149_v0 }
 0xf35   :  { %v850_v63 = vmax.f32 %v848_v47, 0.0 }
 0xf37   :  { %v852_v5 = vsel %vm152_vm7, %v850_v63, 0.0 }
 0xf38   :  { %v853_v6 = vadd.f32 %v852_v5, %v851_v50 }
 0xf3a   :  { %v854_v12 = vrot.slane %v853_v6, 4 }
 0xf3c   :  { %v855_v8 = vadd.f32 %v854_v12, %v853_v6 }
 0xf3e   :  { %v856_v34 = vrot.slane %v855_v8, 2 }
 0xf40   :  { %v857_v2 = vadd.f32 %v856_v34, %v855_v8 }
 0xf42   :  { %v858_v13 = vrot.slane %v857_v2, 1 }
 0xf44   :  { %v859_v14 = vadd.f32 %v858_v13, %v857_v2 }
 0xf46   :  { %v870_v15 = vmul.f32 %v936_v37, %v859_v14 }
 0xf48   :  { %v872_v16 = vsel %vm871_vm12, %v870_v15, 0.0 }
 0xf49   :  { %873 = vadd.xlane.f32.xlu1 %v872_v16 }
 0xfd6   :  { %v874_v20 = vpop.xlane.xlu1 %873 }
 0xfd7   :  { %v875_v21 = vmul.f32 0.00390625, %v874_v20 }
 0xfd9   :  { %v881_v22 = vmul.f32 %v880_v19, %v875_v21 }
 0xfdb   :  { %v886_v23 = vadd.f32 %v885_v3, %v881_v22 }
 0xfdd   :  { %v888_v0 = vsel %vm887_vm13, %v886_v23, -inf }
 0xfde   :  { %889 = vmax.xlane.f32.xlu0 %v888_v0 }
0x106b   :  { %v890_v24 = vpop.xlane.xlu0 %889 }
0x106c   :  { %v891_v25 = vsub.f32 %v886_v23, %v890_v24 }
0x106e   :  { %v892_v26 = vmul.f32 1.442695, %v891_v25 }
0x1070   :  { %1067 = vpow2.f32 %v892_v26 }
0x107a   :  { %v1068_v27 = vpop.eup %1067 }
0x107b   :  { %v894_v28 = vsel %vm887_vm13, %v1068_v27, 0.0 }
0x107c   :  { %895 = vadd.xlane.f32.xlu0 %v894_v28 }
0x1109   :  { %v896_v29 = vpop.xlane.xlu0 %895 }
0x110a   :  { %1069 = vlog2.f32 %v896_v29 }
0x1114   :  { %v1070_v30 = vpop.eup %1069 }
0x1115   :  { %v898_v31 = vmul.f32 0.6931472, %v1070_v30 }
0x1117   :  { %v899_v32 = vadd.f32 %v898_v31, %v890_v24 }
0x1119   :  { %v900_v33 = vsub.f32 %v886_v23, %v899_v32 }
0x111b   :  { %901 = vst.msk [vmem:[#allocation7] sm:$0x3] %vm887_vm13, %v900_v33 }
0x111c   :  { %1126 = shalt.err (!%p1123_p6)
}
0x111d   :  { %s1127_s12 = scalar_lea.hbm %s1460_s5, 32 }
0x111e   :  { %p1128_p7 = scmp.ne.s32.totalorder %s1460_s5, %s1127_s12  ;;  %p1131_p8 = scmp.lt.u32.totalorder %s1127_s12, %s1460_s5 }
0x1120   :  { %p1133_p9 = pnand %p1131_p8, %p1128_p7 }
0x1122   :  { %1136 = shalt.err (!%p1133_p9)
}
0x1123   :  { %911 = dma.vmem_to_hbm [thread:$0]  %s909_s8, 32, %s1460_s5, [#allocation4]  }
0x1124   :  { %1141 = dma.done.wait [#allocation4], 32  }
0x1125   :  { %1142 = vsyncadd [#allocation4], 4294967264 }
0x1126   :  { %915 = vsyncpa [#allocation3], 1 }
0x1127   :  { %916 = vsyncpa [#allocation6], 1 }
0x1128   :  { %917 = vsyncpa [#allocation4], 1 }

</bundles_post_ra>
